<compile_context>
chip_gen: v7x
topology: tpu7x:2x2x1
jax: 0.10.0
libtpu: 0.0.40
codegen_flags: <defaults>
</compile_context>

<pallas_src>
import functools

import jax
import jax.numpy as jnp
from jax.experimental import pallas as pl
from jax.experimental.pallas import tpu as pltpu


def _ceil_div(a, b):
    return -(-a // b)


def _round_up(a, b):
    return _ceil_div(a, b) * b


def _fused_encdec_kernel(x_ref, w_ref, sb_ref, o_ref, *, plan, lp, cpad):
    """Whole encoder-decoder stack for one batch element; activations stay in
    vregs/VMEM across a static Python layer loop.

    Layout: a logical length-n signal is stored phase-major as a (P*lp, cpad)
    slab where flat row p*lp + j holds logical position n = j*P + p.  A stride-1
    conv keeps P; a stride-2 transposed conv doubles P (polyphase — no
    zero-stuffing, no O(L^2) work).  All phase blocks are lp rows (8-aligned),
    so block-granular concats are tile-aligned copies; only the 1-row
    phase-boundary shifts touch the XLU.

    x_ref : (1, lp, cpad)           bf16  zero-padded (rows & channel lanes) input
    w_ref : (NL, 3, cpad, cpad)     bf16  per-layer per-tap weights (Cin x Cout)
    sb_ref: (NL, 2, cpad)           f32   row0 = fused scale, row1 = fused bias
    o_ref : (1, P_final*lp, cpad)   bf16  final activation, phase-major
    plan  : static tuple of (is_deconv, P_in, n_valid_in) per layer.
    """
    nl = len(plan)
    cur = x_ref[0]                                            # (lp, cpad) bf16
    ji = jax.lax.broadcasted_iota(jnp.int32, (lp, 1), 0)      # row-in-block index

    for li, (is_deconv, P, n_valid) in enumerate(plan):
        is_last = li == nl - 1
        w = w_ref[li]                                         # (3, cpad, cpad) bf16
        sb = sb_ref[li]                                       # (2, cpad) f32
        scale, bias = sb[0:1, :], sb[1:2, :]
        zrow = jnp.zeros((1, cpad), cur.dtype)

        # "logical next element" operand: block p holds phase p+1; block P-1
        # holds phase 0 shifted up one row (tile-aligned slices + one 1-row shift).
        nxt_pieces = ([cur[lp:, :]] if P > 1 else []) + [cur[1:lp, :], zrow]
        x_next = jnp.concatenate(nxt_pieces, axis=0)

        if is_deconv:
            # ConvTranspose1d(k=3, s=2, p=1), polyphase:
            #   y[2n]   = x[n]   @ W1
            #   y[2n+1] = x[n+1] @ W0 + x[n] @ W2
            ye = jnp.dot(cur, w[1], preferred_element_type=jnp.float32)
            yo = jnp.dot(x_next, w[0], preferred_element_type=jnp.float32)
            yo = yo + jnp.dot(cur, w[2], preferred_element_type=jnp.float32)
            ye = jnp.maximum(ye * scale + bias, 0.0)          # folded bias+BN, ReLU
            yo = jnp.maximum(yo * scale + bias, 0.0)
            p_out, n_out = 2 * P, 2 * n_valid - 1
            # Interleave even/odd phase blocks (tile-aligned concat) and zero the
            # few rows past the valid logical length so they cannot leak into the
            # next layer through the phase-boundary shifts.
            blocks = []
            for p in range(P):
                for q, src in ((2 * p, ye), (2 * p + 1, yo)):
                    blk = src[p * lp:(p + 1) * lp, :]
                    vrows = max(0, min(lp, _ceil_div(n_out - q, p_out)))
                    if vrows < lp:
                        blk = jnp.where(ji < vrows, blk, 0.0)
                    blocks.append(blk)
            y = jnp.concatenate(blocks, axis=0)
        else:
            # Conv1d(k=3, s=1, p=1): y[n] = x[n-1]@W0 + x[n]@W1 + x[n+1]@W2,
            # as three accumulated per-tap matmuls (contraction depth = cpad).
            prv_pieces = [zrow, cur[(P - 1) * lp:P * lp - 1, :]] + \
                         ([cur[:(P - 1) * lp, :]] if P > 1 else [])
            x_prev = jnp.concatenate(prv_pieces, axis=0)
            acc = jnp.dot(x_prev, w[0], preferred_element_type=jnp.float32)
            acc = acc + jnp.dot(cur, w[1], preferred_element_type=jnp.float32)
            acc = acc + jnp.dot(x_next, w[2], preferred_element_type=jnp.float32)
            y = jnp.maximum(acc * scale + bias, 0.0)
            if is_last:
                y = jax.nn.sigmoid(y)                         # decoder's final Sigmoid
            p_out, n_out = P, n_valid
            if (not is_last) and n_out < p_out * lp:          # re-zero invalid rows
                blocks = []
                for p in range(p_out):
                    blk = y[p * lp:(p + 1) * lp, :]
                    vrows = max(0, min(lp, _ceil_div(n_out - p, p_out)))
                    if vrows < lp:
                        blk = jnp.where(ji < vrows, blk, 0.0)
                    blocks.append(blk)
                y = blocks[0] if p_out == 1 else jnp.concatenate(blocks, axis=0)

        cur = y.astype(jnp.bfloat16)                          # bf16 between layers

    o_ref[0] = cur                                            # dense 128-lane bf16 store


def init_params(key, input_dim, num_layers=3, initial_filter=32,
                latent_dim=8, kernel_size=3):
    """Deterministic synthetic parameters mirroring the module's __init__ shapes."""
    specs = []
    cin = input_dim
    for i in range(num_layers):                      # encoder conv blocks
        cout = initial_filter if i == 0 else cin // 2
        specs.append(("conv", cin, cout))
        cin = cout
    specs.append(("conv", cin, latent_dim))          # encoder bottleneck conv
    cin = latent_dim
    for _ in range(num_layers):                      # decoder deconv blocks
        specs.append(("deconv", cin, 2 * cin))
        cin = 2 * cin
    specs.append(("conv", cin, input_dim))           # decoder output conv (+sigmoid)

    params = []
    for typ, ci, co in specs:
        key, k1, k2, k3, k4, k5, k6 = jax.random.split(key, 7)
        if typ == "conv":
            w = 0.1 * jax.random.normal(k1, (co, ci, kernel_size), jnp.float32)
        else:  # ConvTranspose1d weight layout: (Cin, Cout, K)
            w = 0.1 * jax.random.normal(k1, (ci, co, kernel_size), jnp.float32)
        params.append(dict(
            type=typ,
            w=w,
            b=0.1 * jax.random.normal(k2, (co,), jnp.float32),
            gamma=1.0 + 0.1 * jax.random.normal(k3, (co,), jnp.float32),
            beta=0.1 * jax.random.normal(k4, (co,), jnp.float32),
            mean=0.1 * jax.random.normal(k5, (co,), jnp.float32),
            var=jax.random.uniform(k6, (co,), jnp.float32, 0.5, 1.5),
        ))
    return params


def encoder_decoder_cnn1d_forward(z_ncl, params, eps=1e-5):
    """z_ncl: (B, C, L) NCL like PyTorch. Returns (B, C, L_out), L_out = 8L - 7."""
    x = jnp.transpose(z_ncl, (0, 2, 1)).astype(jnp.float32)   # (B, L, C)
    B, L0, c_in0 = x.shape

    chans = [c_in0] + [int(p["w"].shape[0] if p["type"] == "conv" else p["w"].shape[1])
                       for p in params]
    cpad = _round_up(max(chans), 128)        # 128-lane dense stores everywhere
    lp = _round_up(L0, 8)                    # 8-sublane-aligned phase blocks

    # Host-side prep (runs once): fold conv/deconv bias + eval-BatchNorm into a
    # per-channel scale/bias, store per-layer per-tap (Cin x Cout) weights.
    w_blocks, sb_blocks, plan = [], [], []
    P, n_valid, flops = 1, L0, 0
    for p in params:
        scale = p["gamma"] / jnp.sqrt(p["var"] + eps)
        bias = p["beta"] + scale * (p["b"] - p["mean"])
        if p["type"] == "conv":
            w_taps = jnp.transpose(p["w"], (2, 1, 0))         # (K, Cin, Cout)
            is_deconv = 0
        else:  # ConvTranspose1d(k=3, s=2, p=1): taps used un-flipped in polyphase
            w_taps = jnp.transpose(p["w"], (2, 0, 1))         # (K, Cin, Cout)
            is_deconv = 1
        K, ci, co = w_taps.shape
        assert K == 3, "kernel assumes kernel_size=3 / padding=1 as in the module"
        wp = jnp.zeros((K, cpad, cpad), jnp.float32).at[:, :ci, :co].set(w_taps)
        w_blocks.append(wp)
        sbp = jnp.zeros((2, cpad), jnp.float32)
        sb_blocks.append(sbp.at[0, :co].set(scale).at[1, :co].set(bias))
        plan.append((is_deconv, P, n_valid))
        flops += 2 * 3 * (P * lp) * cpad * cpad
        if is_deconv:
            P, n_valid = 2 * P, 2 * n_valid - 1

    nl = len(params)
    p_final, l_final = P, n_valid
    out_rows = p_final * lp
    w_all = jnp.stack(w_blocks).astype(jnp.bfloat16)          # (NL, 3, cpad, cpad)
    sb_all = jnp.stack(sb_blocks).astype(jnp.float32)         # (NL, 2, cpad)
    x_pad = jnp.zeros((B, lp, cpad), jnp.bfloat16).at[:, :L0, :c_in0].set(
        x.astype(jnp.bfloat16))                               # (B, lp, cpad)

    kernel = functools.partial(_fused_encdec_kernel,
                               plan=tuple(plan), lp=lp, cpad=cpad)

    cost = pl.CostEstimate(
        flops=int(B * flops),
        transcendentals=int(B * out_rows * cpad),             # final sigmoid
        bytes_accessed=int(x_pad.size * 2 + w_all.size * 2 + sb_all.size * 4
                           + B * out_rows * cpad * 2),
    )

    out = pl.pallas_call(
        kernel,
        out_shape=jax.ShapeDtypeStruct((B, out_rows, cpad), jnp.bfloat16),
        grid_spec=pltpu.PrefetchScalarGridSpec(
            num_scalar_prefetch=0,
            grid=(B,),
            in_specs=[
                pl.BlockSpec((1, lp, cpad), lambda b: (b, 0, 0)),
                # Constant index_map => weights / scale-bias fetched once and
                # VMEM-resident across the whole batch grid.
                # TODO(synk): pipeline_mode=pl.Buffered(1) would also drop their
                # second pipeline buffer (~0.8 MiB); omitted for broad JAX-version
                # compatibility — the explicit VMEM budget below has ample headroom.
                pl.BlockSpec((nl, 3, cpad, cpad), lambda b: (0, 0, 0, 0)),
                pl.BlockSpec((nl, 2, cpad), lambda b: (0, 0, 0)),
            ],
            out_specs=pl.BlockSpec((1, out_rows, cpad), lambda b: (b, 0, 0)),
        ),
        compiler_params=pltpu.CompilerParams(
            dimension_semantics=("parallel",),    # batch shards across v7x's 2 TCs
            vmem_limit_bytes=32 * 1024 * 1024,
        ),
        cost_estimate=cost,
    )(x_pad, w_all, sb_all)

    # De-interleave phase-major -> natural order, strip padding (cheap XLA ops on
    # the small bf16 output slab, outside the kernel).
    out = out.reshape(B, p_final, lp, cpad)
    out = jnp.transpose(out, (0, 2, 1, 3)).reshape(B, lp * p_final, cpad)
    out = out[:, :l_final, :c_in0]
    return jnp.transpose(out, (0, 2, 1))                      # (B, C, L_out)


def _reference_forward(z_ncl, params, eps=1e-5):
    """Pure-JAX f32 reference of the PyTorch module (eval mode)."""
    x = z_ncl.astype(jnp.float32)                             # (B, C, L)
    for p in params:
        if p["type"] == "conv":
            y = jax.lax.conv_general_dilated(
                x, p["w"], window_strides=(1,), padding=[(1, 1)],
                dimension_numbers=("NCH", "OIH", "NCH"))
        else:  # ConvTranspose1d(k=3, s=2, p=1) == lhs-dilated conv, flipped taps
            w = jnp.transpose(jnp.flip(p["w"], axis=2), (1, 0, 2))   # (Cout, Cin, K)
            y = jax.lax.conv_general_dilated(
                x, w, window_strides=(1,), padding=[(1, 1)],
                lhs_dilation=(2,), dimension_numbers=("NCH", "OIH", "NCH"))
        y = y + p["b"][None, :, None]
        scale = (p["gamma"] / jnp.sqrt(p["var"] + eps))[None, :, None]
        y = (y - p["mean"][None, :, None]) * scale + p["beta"][None, :, None]
        x = jnp.maximum(y, 0.0)
    return jax.nn.sigmoid(x)


if __name__ == "__main__":
    key = jax.random.PRNGKey(0)
    k_param, k_in = jax.random.split(key)

    # Small-but-faithful hyperparameters (same structure as the module defaults).
    input_dim, num_layers, initial_filter, latent_dim, ksz = 4, 3, 32, 8, 3
    params = init_params(k_param, input_dim, num_layers, initial_filter,
                         latent_dim, ksz)

    B, L = 2, 16
    z = jax.random.uniform(k_in, (B, input_dim, L), jnp.float32)   # NCL input

    out = encoder_decoder_cnn1d_forward(z, params)
    out = jax.block_until_ready(out)

    expected_L = 8 * L - 7   # three stride-2 transposed convs: L -> 2L-1 each
    assert out.shape == (B, input_dim, expected_L), out.shape
    outf = out.astype(jnp.float32)
    assert bool(jnp.all(jnp.isfinite(outf)))

    ref = _reference_forward(z, params)
    err = float(jnp.max(jnp.abs(outf - ref)))
    assert err < 7e-2, f"max abs err vs f32 reference: {err}"

    # sigmoid(ReLU(.)) in [0.5, 1]
    assert bool(jnp.all(outf >= 0.5 - 1e-2)) and bool(jnp.all(outf <= 1.0 + 1e-2))
    print("KERNEL_OK")
</pallas_src>

<mosaic_0001>
module attributes {stable_mosaic.version = 11 : i64} {
  func.func @_fused_encdec_kernel(%arg0: i32, %arg1: memref<1x16x128xbf16, #tpu.memory_space<vmem>>, %arg2: memref<8x3x128x128xbf16, #tpu.memory_space<vmem>>, %arg3: memref<8x2x128xf32, #tpu.memory_space<vmem>>, %arg4: memref<1x128x128xbf16, #tpu.memory_space<vmem>>) attributes {dimension_semantics = [#tpu.dimension_semantics<parallel>], iteration_bounds = array<i64: 2>, scalar_prefetch = 0 : i64, scratch_operands = 0 : i64, tpu.core_type = #tpu.core_type<tc>, window_params = [{transform_indices = @transform_0, window_bounds = array<i64: 1, 16, 128>}, {pipeline_mode = #tpu.pipeline_mode<synchronous>, transform_indices = @transform_1, window_bounds = array<i64: 8, 3, 128, 128>}, {pipeline_mode = #tpu.pipeline_mode<synchronous>, transform_indices = @transform_2, window_bounds = array<i64: 8, 2, 128>}, {transform_indices = @transform_3, window_bounds = array<i64: 1, 128, 128>}]} {
    %c0 = arith.constant 0 : index
    %c0_0 = arith.constant 0 : index
    %c0_1 = arith.constant 0 : index
    %0 = vector.load %arg1[%c0, %c0_0, %c0_1] : memref<1x16x128xbf16, #tpu.memory_space<vmem>>, vector<1x16x128xbf16>
    %1 = vector.shape_cast %0 : vector<1x16x128xbf16> to vector<16x128xbf16>
    %2 = tpu.iota {dimensions = array<i32: 0>} : vector<16x1xi32>
    %c0_2 = arith.constant 0 : index
    %c0_3 = arith.constant 0 : index
    %c0_4 = arith.constant 0 : index
    %c0_5 = arith.constant 0 : index
    %3 = vector.load %arg2[%c0_2, %c0_3, %c0_4, %c0_5] : memref<8x3x128x128xbf16, #tpu.memory_space<vmem>>, vector<1x3x128x128xbf16>
    %4 = vector.shape_cast %3 : vector<1x3x128x128xbf16> to vector<3x128x128xbf16>
    %c0_6 = arith.constant 0 : index
    %c0_7 = arith.constant 0 : index
    %c0_8 = arith.constant 0 : index
    %5 = vector.load %arg3[%c0_6, %c0_7, %c0_8] : memref<8x2x128xf32, #tpu.memory_space<vmem>>, vector<1x2x128xf32>
    %6 = vector.shape_cast %5 : vector<1x2x128xf32> to vector<2x128xf32>
    %7 = vector.extract_strided_slice %6 {offsets = [0, 0], sizes = [1, 128], strides = [1, 1]} : vector<2x128xf32> to vector<1x128xf32>
    %8 = vector.extract_strided_slice %6 {offsets = [1, 0], sizes = [1, 128], strides = [1, 1]} : vector<2x128xf32> to vector<1x128xf32>
    %cst = arith.constant 0.000000e+00 : bf16
    %9 = vector.broadcast %cst : bf16 to vector<1x128xbf16>
    %10 = vector.extract_strided_slice %1 {offsets = [1, 0], sizes = [15, 128], strides = [1, 1]} : vector<16x128xbf16> to vector<15x128xbf16>
    %11 = tpu.concatenate %10, %9 in 0 : vector<15x128xbf16>, vector<1x128xbf16> -> vector<16x128xbf16>
    %12 = vector.extract_strided_slice %1 {offsets = [0, 0], sizes = [15, 128], strides = [1, 1]} : vector<16x128xbf16> to vector<15x128xbf16>
    %13 = tpu.concatenate %9, %12 in 0 : vector<1x128xbf16>, vector<15x128xbf16> -> vector<16x128xbf16>
    %14 = vector.extract_strided_slice %4 {offsets = [0, 0, 0], sizes = [1, 128, 128], strides = [1, 1, 1]} : vector<3x128x128xbf16> to vector<1x128x128xbf16>
    %15 = vector.shape_cast %14 : vector<1x128x128xbf16> to vector<128x128xbf16>
    %cst_9 = arith.constant dense<0.000000e+00> : vector<16x128xf32>
    %16 = tpu.matmul %13, %15, %cst_9 {dimension_numbers = #tpu.dot_dimension_numbers<[1], [0], [0], [1], [0, 0, 1, 1], [], []>} : vector<16x128xbf16>, vector<128x128xbf16>, vector<16x128xf32> -> vector<16x128xf32>
    %17 = vector.extract_strided_slice %4 {offsets = [1, 0, 0], sizes = [1, 128, 128], strides = [1, 1, 1]} : vector<3x128x128xbf16> to vector<1x128x128xbf16>
    %18 = vector.shape_cast %17 : vector<1x128x128xbf16> to vector<128x128xbf16>
    %cst_10 = arith.constant dense<0.000000e+00> : vector<16x128xf32>
    %19 = tpu.matmul %1, %18, %cst_10 {dimension_numbers = #tpu.dot_dimension_numbers<[1], [0], [0], [1], [0, 0, 1, 1], [], []>} : vector<16x128xbf16>, vector<128x128xbf16>, vector<16x128xf32> -> vector<16x128xf32>
    %20 = arith.addf %16, %19 : vector<16x128xf32>
    %21 = vector.extract_strided_slice %4 {offsets = [2, 0, 0], sizes = [1, 128, 128], strides = [1, 1, 1]} : vector<3x128x128xbf16> to vector<1x128x128xbf16>
    %22 = vector.shape_cast %21 : vector<1x128x128xbf16> to vector<128x128xbf16>
    %cst_11 = arith.constant dense<0.000000e+00> : vector<16x128xf32>
    %23 = tpu.matmul %11, %22, %cst_11 {dimension_numbers = #tpu.dot_dimension_numbers<[1], [0], [0], [1], [0, 0, 1, 1], [], []>} : vector<16x128xbf16>, vector<128x128xbf16>, vector<16x128xf32> -> vector<16x128xf32>
    %24 = arith.addf %20, %23 : vector<16x128xf32>
    %25 = vector.broadcast %7 : vector<1x128xf32> to vector<16x128xf32>
    %26 = arith.mulf %24, %25 : vector<16x128xf32>
    %27 = vector.broadcast %8 : vector<1x128xf32> to vector<16x128xf32>
    %28 = arith.addf %26, %27 : vector<16x128xf32>
    %cst_12 = arith.constant 0.000000e+00 : f32
    %29 = vector.broadcast %cst_12 : f32 to vector<16x128xf32>
    %30 = arith.maximumf %28, %29 : vector<16x128xf32>
    %31 = arith.truncf %30 : vector<16x128xf32> to vector<16x128xbf16>
    %c1 = arith.constant 1 : index
    %c0_13 = arith.constant 0 : index
    %c0_14 = arith.constant 0 : index
    %c0_15 = arith.constant 0 : index
    %32 = vector.load %arg2[%c1, %c0_13, %c0_14, %c0_15] : memref<8x3x128x128xbf16, #tpu.memory_space<vmem>>, vector<1x3x128x128xbf16>
    %33 = vector.shape_cast %32 : vector<1x3x128x128xbf16> to vector<3x128x128xbf16>
    %c1_16 = arith.constant 1 : index
    %c0_17 = arith.constant 0 : index
    %c0_18 = arith.constant 0 : index
    %34 = vector.load %arg3[%c1_16, %c0_17, %c0_18] : memref<8x2x128xf32, #tpu.memory_space<vmem>>, vector<1x2x128xf32>
    %35 = vector.shape_cast %34 : vector<1x2x128xf32> to vector<2x128xf32>
    %36 = vector.extract_strided_slice %35 {offsets = [0, 0], sizes = [1, 128], strides = [1, 1]} : vector<2x128xf32> to vector<1x128xf32>
    %37 = vector.extract_strided_slice %35 {offsets = [1, 0], sizes = [1, 128], strides = [1, 1]} : vector<2x128xf32> to vector<1x128xf32>
    %cst_19 = arith.constant 0.000000e+00 : bf16
    %38 = vector.broadcast %cst_19 : bf16 to vector<1x128xbf16>
    %39 = vector.extract_strided_slice %31 {offsets = [1, 0], sizes = [15, 128], strides = [1, 1]} : vector<16x128xbf16> to vector<15x128xbf16>
    %40 = tpu.concatenate %39, %38 in 0 : vector<15x128xbf16>, vector<1x128xbf16> -> vector<16x128xbf16>
    %41 = vector.extract_strided_slice %31 {offsets = [0, 0], sizes = [15, 128], strides = [1, 1]} : vector<16x128xbf16> to vector<15x128xbf16>
    %42 = tpu.concatenate %38, %41 in 0 : vector<1x128xbf16>, vector<15x128xbf16> -> vector<16x128xbf16>
    %43 = vector.extract_strided_slice %33 {offsets = [0, 0, 0], sizes = [1, 128, 128], strides = [1, 1, 1]} : vector<3x128x128xbf16> to vector<1x128x128xbf16>
    %44 = vector.shape_cast %43 : vector<1x128x128xbf16> to vector<128x128xbf16>
    %cst_20 = arith.constant dense<0.000000e+00> : vector<16x128xf32>
    %45 = tpu.matmul %42, %44, %cst_20 {dimension_numbers = #tpu.dot_dimension_numbers<[1], [0], [0], [1], [0, 0, 1, 1], [], []>} : vector<16x128xbf16>, vector<128x128xbf16>, vector<16x128xf32> -> vector<16x128xf32>
    %46 = vector.extract_strided_slice %33 {offsets = [1, 0, 0], sizes = [1, 128, 128], strides = [1, 1, 1]} : vector<3x128x128xbf16> to vector<1x128x128xbf16>
    %47 = vector.shape_cast %46 : vector<1x128x128xbf16> to vector<128x128xbf16>
    %cst_21 = arith.constant dense<0.000000e+00> : vector<16x128xf32>
    %48 = tpu.matmul %31, %47, %cst_21 {dimension_numbers = #tpu.dot_dimension_numbers<[1], [0], [0], [1], [0, 0, 1, 1], [], []>} : vector<16x128xbf16>, vector<128x128xbf16>, vector<16x128xf32> -> vector<16x128xf32>
    %49 = arith.addf %45, %48 : vector<16x128xf32>
    %50 = vector.extract_strided_slice %33 {offsets = [2, 0, 0], sizes = [1, 128, 128], strides = [1, 1, 1]} : vector<3x128x128xbf16> to vector<1x128x128xbf16>
    %51 = vector.shape_cast %50 : vector<1x128x128xbf16> to vector<128x128xbf16>
    %cst_22 = arith.constant dense<0.000000e+00> : vector<16x128xf32>
    %52 = tpu.matmul %40, %51, %cst_22 {dimension_numbers = #tpu.dot_dimension_numbers<[1], [0], [0], [1], [0, 0, 1, 1], [], []>} : vector<16x128xbf16>, vector<128x128xbf16>, vector<16x128xf32> -> vector<16x128xf32>
    %53 = arith.addf %49, %52 : vector<16x128xf32>
    %54 = vector.broadcast %36 : vector<1x128xf32> to vector<16x128xf32>
    %55 = arith.mulf %53, %54 : vector<16x128xf32>
    %56 = vector.broadcast %37 : vector<1x128xf32> to vector<16x128xf32>
    %57 = arith.addf %55, %56 : vector<16x128xf32>
    %cst_23 = arith.constant 0.000000e+00 : f32
    %58 = vector.broadcast %cst_23 : f32 to vector<16x128xf32>
    %59 = arith.maximumf %57, %58 : vector<16x128xf32>
    %60 = arith.truncf %59 : vector<16x128xf32> to vector<16x128xbf16>
    %c2 = arith.constant 2 : index
    %c0_24 = arith.constant 0 : index
    %c0_25 = arith.constant 0 : index
    %c0_26 = arith.constant 0 : index
    %61 = vector.load %arg2[%c2, %c0_24, %c0_25, %c0_26] : memref<8x3x128x128xbf16, #tpu.memory_space<vmem>>, vector<1x3x128x128xbf16>
    %62 = vector.shape_cast %61 : vector<1x3x128x128xbf16> to vector<3x128x128xbf16>
    %c2_27 = arith.constant 2 : index
    %c0_28 = arith.constant 0 : index
    %c0_29 = arith.constant 0 : index
    %63 = vector.load %arg3[%c2_27, %c0_28, %c0_29] : memref<8x2x128xf32, #tpu.memory_space<vmem>>, vector<1x2x128xf32>
    %64 = vector.shape_cast %63 : vector<1x2x128xf32> to vector<2x128xf32>
    %65 = vector.extract_strided_slice %64 {offsets = [0, 0], sizes = [1, 128], strides = [1, 1]} : vector<2x128xf32> to vector<1x128xf32>
    %66 = vector.extract_strided_slice %64 {offsets = [1, 0], sizes = [1, 128], strides = [1, 1]} : vector<2x128xf32> to vector<1x128xf32>
    %cst_30 = arith.constant 0.000000e+00 : bf16
    %67 = vector.broadcast %cst_30 : bf16 to vector<1x128xbf16>
    %68 = vector.extract_strided_slice %60 {offsets = [1, 0], sizes = [15, 128], strides = [1, 1]} : vector<16x128xbf16> to vector<15x128xbf16>
    %69 = tpu.concatenate %68, %67 in 0 : vector<15x128xbf16>, vector<1x128xbf16> -> vector<16x128xbf16>
    %70 = vector.extract_strided_slice %60 {offsets = [0, 0], sizes = [15, 128], strides = [1, 1]} : vector<16x128xbf16> to vector<15x128xbf16>
    %71 = tpu.concatenate %67, %70 in 0 : vector<1x128xbf16>, vector<15x128xbf16> -> vector<16x128xbf16>
    %72 = vector.extract_strided_slice %62 {offsets = [0, 0, 0], sizes = [1, 128, 128], strides = [1, 1, 1]} : vector<3x128x128xbf16> to vector<1x128x128xbf16>
    %73 = vector.shape_cast %72 : vector<1x128x128xbf16> to vector<128x128xbf16>
    %cst_31 = arith.constant dense<0.000000e+00> : vector<16x128xf32>
    %74 = tpu.matmul %71, %73, %cst_31 {dimension_numbers = #tpu.dot_dimension_numbers<[1], [0], [0], [1], [0, 0, 1, 1], [], []>} : vector<16x128xbf16>, vector<128x128xbf16>, vector<16x128xf32> -> vector<16x128xf32>
    %75 = vector.extract_strided_slice %62 {offsets = [1, 0, 0], sizes = [1, 128, 128], strides = [1, 1, 1]} : vector<3x128x128xbf16> to vector<1x128x128xbf16>
    %76 = vector.shape_cast %75 : vector<1x128x128xbf16> to vector<128x128xbf16>
    %cst_32 = arith.constant dense<0.000000e+00> : vector<16x128xf32>
    %77 = tpu.matmul %60, %76, %cst_32 {dimension_numbers = #tpu.dot_dimension_numbers<[1], [0], [0], [1], [0, 0, 1, 1], [], []>} : vector<16x128xbf16>, vector<128x128xbf16>, vector<16x128xf32> -> vector<16x128xf32>
    %78 = arith.addf %74, %77 : vector<16x128xf32>
    %79 = vector.extract_strided_slice %62 {offsets = [2, 0, 0], sizes = [1, 128, 128], strides = [1, 1, 1]} : vector<3x128x128xbf16> to vector<1x128x128xbf16>
    %80 = vector.shape_cast %79 : vector<1x128x128xbf16> to vector<128x128xbf16>
    %cst_33 = arith.constant dense<0.000000e+00> : vector<16x128xf32>
    %81 = tpu.matmul %69, %80, %cst_33 {dimension_numbers = #tpu.dot_dimension_numbers<[1], [0], [0], [1], [0, 0, 1, 1], [], []>} : vector<16x128xbf16>, vector<128x128xbf16>, vector<16x128xf32> -> vector<16x128xf32>
    %82 = arith.addf %78, %81 : vector<16x128xf32>
    %83 = vector.broadcast %65 : vector<1x128xf32> to vector<16x128xf32>
    %84 = arith.mulf %82, %83 : vector<16x128xf32>
    %85 = vector.broadcast %66 : vector<1x128xf32> to vector<16x128xf32>
    %86 = arith.addf %84, %85 : vector<16x128xf32>
    %cst_34 = arith.constant 0.000000e+00 : f32
    %87 = vector.broadcast %cst_34 : f32 to vector<16x128xf32>
    %88 = arith.maximumf %86, %87 : vector<16x128xf32>
    %89 = arith.truncf %88 : vector<16x128xf32> to vector<16x128xbf16>
    %c3 = arith.constant 3 : index
    %c0_35 = arith.constant 0 : index
    %c0_36 = arith.constant 0 : index
    %c0_37 = arith.constant 0 : index
    %90 = vector.load %arg2[%c3, %c0_35, %c0_36, %c0_37] : memref<8x3x128x128xbf16, #tpu.memory_space<vmem>>, vector<1x3x128x128xbf16>
    %91 = vector.shape_cast %90 : vector<1x3x128x128xbf16> to vector<3x128x128xbf16>
    %c3_38 = arith.constant 3 : index
    %c0_39 = arith.constant 0 : index
    %c0_40 = arith.constant 0 : index
    %92 = vector.load %arg3[%c3_38, %c0_39, %c0_40] : memref<8x2x128xf32, #tpu.memory_space<vmem>>, vector<1x2x128xf32>
    %93 = vector.shape_cast %92 : vector<1x2x128xf32> to vector<2x128xf32>
    %94 = vector.extract_strided_slice %93 {offsets = [0, 0], sizes = [1, 128], strides = [1, 1]} : vector<2x128xf32> to vector<1x128xf32>
    %95 = vector.extract_strided_slice %93 {offsets = [1, 0], sizes = [1, 128], strides = [1, 1]} : vector<2x128xf32> to vector<1x128xf32>
    %cst_41 = arith.constant 0.000000e+00 : bf16
    %96 = vector.broadcast %cst_41 : bf16 to vector<1x128xbf16>
    %97 = vector.extract_strided_slice %89 {offsets = [1, 0], sizes = [15, 128], strides = [1, 1]} : vector<16x128xbf16> to vector<15x128xbf16>
    %98 = tpu.concatenate %97, %96 in 0 : vector<15x128xbf16>, vector<1x128xbf16> -> vector<16x128xbf16>
    %99 = vector.extract_strided_slice %89 {offsets = [0, 0], sizes = [15, 128], strides = [1, 1]} : vector<16x128xbf16> to vector<15x128xbf16>
    %100 = tpu.concatenate %96, %99 in 0 : vector<1x128xbf16>, vector<15x128xbf16> -> vector<16x128xbf16>
    %101 = vector.extract_strided_slice %91 {offsets = [0, 0, 0], sizes = [1, 128, 128], strides = [1, 1, 1]} : vector<3x128x128xbf16> to vector<1x128x128xbf16>
    %102 = vector.shape_cast %101 : vector<1x128x128xbf16> to vector<128x128xbf16>
    %cst_42 = arith.constant dense<0.000000e+00> : vector<16x128xf32>
    %103 = tpu.matmul %100, %102, %cst_42 {dimension_numbers = #tpu.dot_dimension_numbers<[1], [0], [0], [1], [0, 0, 1, 1], [], []>} : vector<16x128xbf16>, vector<128x128xbf16>, vector<16x128xf32> -> vector<16x128xf32>
    %104 = vector.extract_strided_slice %91 {offsets = [1, 0, 0], sizes = [1, 128, 128], strides = [1, 1, 1]} : vector<3x128x128xbf16> to vector<1x128x128xbf16>
    %105 = vector.shape_cast %104 : vector<1x128x128xbf16> to vector<128x128xbf16>
    %cst_43 = arith.constant dense<0.000000e+00> : vector<16x128xf32>
    %106 = tpu.matmul %89, %105, %cst_43 {dimension_numbers = #tpu.dot_dimension_numbers<[1], [0], [0], [1], [0, 0, 1, 1], [], []>} : vector<16x128xbf16>, vector<128x128xbf16>, vector<16x128xf32> -> vector<16x128xf32>
    %107 = arith.addf %103, %106 : vector<16x128xf32>
    %108 = vector.extract_strided_slice %91 {offsets = [2, 0, 0], sizes = [1, 128, 128], strides = [1, 1, 1]} : vector<3x128x128xbf16> to vector<1x128x128xbf16>
    %109 = vector.shape_cast %108 : vector<1x128x128xbf16> to vector<128x128xbf16>
    %cst_44 = arith.constant dense<0.000000e+00> : vector<16x128xf32>
    %110 = tpu.matmul %98, %109, %cst_44 {dimension_numbers = #tpu.dot_dimension_numbers<[1], [0], [0], [1], [0, 0, 1, 1], [], []>} : vector<16x128xbf16>, vector<128x128xbf16>, vector<16x128xf32> -> vector<16x128xf32>
    %111 = arith.addf %107, %110 : vector<16x128xf32>
    %112 = vector.broadcast %94 : vector<1x128xf32> to vector<16x128xf32>
    %113 = arith.mulf %111, %112 : vector<16x128xf32>
    %114 = vector.broadcast %95 : vector<1x128xf32> to vector<16x128xf32>
    %115 = arith.addf %113, %114 : vector<16x128xf32>
    %cst_45 = arith.constant 0.000000e+00 : f32
    %116 = vector.broadcast %cst_45 : f32 to vector<16x128xf32>
    %117 = arith.maximumf %115, %116 : vector<16x128xf32>
    %118 = arith.truncf %117 : vector<16x128xf32> to vector<16x128xbf16>
    %c4 = arith.constant 4 : index
    %c0_46 = arith.constant 0 : index
    %c0_47 = arith.constant 0 : index
    %c0_48 = arith.constant 0 : index
    %119 = vector.load %arg2[%c4, %c0_46, %c0_47, %c0_48] : memref<8x3x128x128xbf16, #tpu.memory_space<vmem>>, vector<1x3x128x128xbf16>
    %120 = vector.shape_cast %119 : vector<1x3x128x128xbf16> to vector<3x128x128xbf16>
    %c4_49 = arith.constant 4 : index
    %c0_50 = arith.constant 0 : index
    %c0_51 = arith.constant 0 : index
    %121 = vector.load %arg3[%c4_49, %c0_50, %c0_51] : memref<8x2x128xf32, #tpu.memory_space<vmem>>, vector<1x2x128xf32>
    %122 = vector.shape_cast %121 : vector<1x2x128xf32> to vector<2x128xf32>
    %123 = vector.extract_strided_slice %122 {offsets = [0, 0], sizes = [1, 128], strides = [1, 1]} : vector<2x128xf32> to vector<1x128xf32>
    %124 = vector.extract_strided_slice %122 {offsets = [1, 0], sizes = [1, 128], strides = [1, 1]} : vector<2x128xf32> to vector<1x128xf32>
    %cst_52 = arith.constant 0.000000e+00 : bf16
    %125 = vector.broadcast %cst_52 : bf16 to vector<1x128xbf16>
    %126 = vector.extract_strided_slice %118 {offsets = [1, 0], sizes = [15, 128], strides = [1, 1]} : vector<16x128xbf16> to vector<15x128xbf16>
    %127 = tpu.concatenate %126, %125 in 0 : vector<15x128xbf16>, vector<1x128xbf16> -> vector<16x128xbf16>
    %128 = vector.extract_strided_slice %120 {offsets = [1, 0, 0], sizes = [1, 128, 128], strides = [1, 1, 1]} : vector<3x128x128xbf16> to vector<1x128x128xbf16>
    %129 = vector.shape_cast %128 : vector<1x128x128xbf16> to vector<128x128xbf16>
    %cst_53 = arith.constant dense<0.000000e+00> : vector<16x128xf32>
    %130 = tpu.matmul %118, %129, %cst_53 {dimension_numbers = #tpu.dot_dimension_numbers<[1], [0], [0], [1], [0, 0, 1, 1], [], []>} : vector<16x128xbf16>, vector<128x128xbf16>, vector<16x128xf32> -> vector<16x128xf32>
    %131 = vector.extract_strided_slice %120 {offsets = [0, 0, 0], sizes = [1, 128, 128], strides = [1, 1, 1]} : vector<3x128x128xbf16> to vector<1x128x128xbf16>
    %132 = vector.shape_cast %131 : vector<1x128x128xbf16> to vector<128x128xbf16>
    %cst_54 = arith.constant dense<0.000000e+00> : vector<16x128xf32>
    %133 = tpu.matmul %127, %132, %cst_54 {dimension_numbers = #tpu.dot_dimension_numbers<[1], [0], [0], [1], [0, 0, 1, 1], [], []>} : vector<16x128xbf16>, vector<128x128xbf16>, vector<16x128xf32> -> vector<16x128xf32>
    %134 = vector.extract_strided_slice %120 {offsets = [2, 0, 0], sizes = [1, 128, 128], strides = [1, 1, 1]} : vector<3x128x128xbf16> to vector<1x128x128xbf16>
    %135 = vector.shape_cast %134 : vector<1x128x128xbf16> to vector<128x128xbf16>
    %cst_55 = arith.constant dense<0.000000e+00> : vector<16x128xf32>
    %136 = tpu.matmul %118, %135, %cst_55 {dimension_numbers = #tpu.dot_dimension_numbers<[1], [0], [0], [1], [0, 0, 1, 1], [], []>} : vector<16x128xbf16>, vector<128x128xbf16>, vector<16x128xf32> -> vector<16x128xf32>
    %137 = arith.addf %133, %136 : vector<16x128xf32>
    %138 = vector.broadcast %123 : vector<1x128xf32> to vector<16x128xf32>
    %139 = arith.mulf %130, %138 : vector<16x128xf32>
    %140 = vector.broadcast %124 : vector<1x128xf32> to vector<16x128xf32>
    %141 = arith.addf %139, %140 : vector<16x128xf32>
    %cst_56 = arith.constant 0.000000e+00 : f32
    %142 = vector.broadcast %cst_56 : f32 to vector<16x128xf32>
    %143 = arith.maximumf %141, %142 : vector<16x128xf32>
    %144 = vector.broadcast %123 : vector<1x128xf32> to vector<16x128xf32>
    %145 = arith.mulf %137, %144 : vector<16x128xf32>
    %146 = vector.broadcast %124 : vector<1x128xf32> to vector<16x128xf32>
    %147 = arith.addf %145, %146 : vector<16x128xf32>
    %cst_57 = arith.constant 0.000000e+00 : f32
    %148 = vector.broadcast %cst_57 : f32 to vector<16x128xf32>
    %149 = arith.maximumf %147, %148 : vector<16x128xf32>
    %c15_i32 = arith.constant 15 : i32
    %150 = vector.broadcast %c15_i32 : i32 to vector<16x1xi32>
    %151 = arith.cmpi slt, %2, %150 : vector<16x1xi32>
    %cst_58 = arith.constant 0.000000e+00 : f32
    %152 = vector.shape_cast %151 : vector<16x1xi1> to vector<16x1xi1>
    %153 = vector.broadcast %152 : vector<16x1xi1> to vector<16x128xi1>
    %154 = vector.broadcast %cst_58 : f32 to vector<16x128xf32>
    %155 = arith.select %153, %149, %154 : vector<16x128xi1>, vector<16x128xf32>
    %156 = tpu.concatenate %143, %155 in 0 : vector<16x128xf32>, vector<16x128xf32> -> vector<32x128xf32>
    %157 = arith.truncf %156 : vector<32x128xf32> to vector<32x128xbf16>
    %c5 = arith.constant 5 : index
    %c0_59 = arith.constant 0 : index
    %c0_60 = arith.constant 0 : index
    %c0_61 = arith.constant 0 : index
    %158 = vector.load %arg2[%c5, %c0_59, %c0_60, %c0_61] : memref<8x3x128x128xbf16, #tpu.memory_space<vmem>>, vector<1x3x128x128xbf16>
    %159 = vector.shape_cast %158 : vector<1x3x128x128xbf16> to vector<3x128x128xbf16>
    %c5_62 = arith.constant 5 : index
    %c0_63 = arith.constant 0 : index
    %c0_64 = arith.constant 0 : index
    %160 = vector.load %arg3[%c5_62, %c0_63, %c0_64] : memref<8x2x128xf32, #tpu.memory_space<vmem>>, vector<1x2x128xf32>
    %161 = vector.shape_cast %160 : vector<1x2x128xf32> to vector<2x128xf32>
    %162 = vector.extract_strided_slice %161 {offsets = [0, 0], sizes = [1, 128], strides = [1, 1]} : vector<2x128xf32> to vector<1x128xf32>
    %163 = vector.extract_strided_slice %161 {offsets = [1, 0], sizes = [1, 128], strides = [1, 1]} : vector<2x128xf32> to vector<1x128xf32>
    %cst_65 = arith.constant 0.000000e+00 : bf16
    %164 = vector.broadcast %cst_65 : bf16 to vector<1x128xbf16>
    %165 = vector.extract_strided_slice %157 {offsets = [16, 0], sizes = [16, 128], strides = [1, 1]} : vector<32x128xbf16> to vector<16x128xbf16>
    %166 = vector.extract_strided_slice %157 {offsets = [1, 0], sizes = [15, 128], strides = [1, 1]} : vector<32x128xbf16> to vector<15x128xbf16>
    %167 = tpu.concatenate %165, %166, %164 in 0 : vector<16x128xbf16>, vector<15x128xbf16>, vector<1x128xbf16> -> vector<32x128xbf16>
    %168 = vector.extract_strided_slice %159 {offsets = [1, 0, 0], sizes = [1, 128, 128], strides = [1, 1, 1]} : vector<3x128x128xbf16> to vector<1x128x128xbf16>
    %169 = vector.shape_cast %168 : vector<1x128x128xbf16> to vector<128x128xbf16>
    %cst_66 = arith.constant dense<0.000000e+00> : vector<32x128xf32>
    %170 = tpu.matmul %157, %169, %cst_66 {dimension_numbers = #tpu.dot_dimension_numbers<[1], [0], [0], [1], [0, 0, 1, 1], [], []>} : vector<32x128xbf16>, vector<128x128xbf16>, vector<32x128xf32> -> vector<32x128xf32>
    %171 = vector.extract_strided_slice %159 {offsets = [0, 0, 0], sizes = [1, 128, 128], strides = [1, 1, 1]} : vector<3x128x128xbf16> to vector<1x128x128xbf16>
    %172 = vector.shape_cast %171 : vector<1x128x128xbf16> to vector<128x128xbf16>
    %cst_67 = arith.constant dense<0.000000e+00> : vector<32x128xf32>
    %173 = tpu.matmul %167, %172, %cst_67 {dimension_numbers = #tpu.dot_dimension_numbers<[1], [0], [0], [1], [0, 0, 1, 1], [], []>} : vector<32x128xbf16>, vector<128x128xbf16>, vector<32x128xf32> -> vector<32x128xf32>
    %174 = vector.extract_strided_slice %159 {offsets = [2, 0, 0], sizes = [1, 128, 128], strides = [1, 1, 1]} : vector<3x128x128xbf16> to vector<1x128x128xbf16>
    %175 = vector.shape_cast %174 : vector<1x128x128xbf16> to vector<128x128xbf16>
    %cst_68 = arith.constant dense<0.000000e+00> : vector<32x128xf32>
    %176 = tpu.matmul %157, %175, %cst_68 {dimension_numbers = #tpu.dot_dimension_numbers<[1], [0], [0], [1], [0, 0, 1, 1], [], []>} : vector<32x128xbf16>, vector<128x128xbf16>, vector<32x128xf32> -> vector<32x128xf32>
    %177 = arith.addf %173, %176 : vector<32x128xf32>
    %178 = vector.broadcast %162 : vector<1x128xf32> to vector<32x128xf32>
    %179 = arith.mulf %170, %178 : vector<32x128xf32>
    %180 = vector.broadcast %163 : vector<1x128xf32> to vector<32x128xf32>
    %181 = arith.addf %179, %180 : vector<32x128xf32>
    %cst_69 = arith.constant 0.000000e+00 : f32
    %182 = vector.broadcast %cst_69 : f32 to vector<32x128xf32>
    %183 = arith.maximumf %181, %182 : vector<32x128xf32>
    %184 = vector.broadcast %162 : vector<1x128xf32> to vector<32x128xf32>
    %185 = arith.mulf %177, %184 : vector<32x128xf32>
    %186 = vector.broadcast %163 : vector<1x128xf32> to vector<32x128xf32>
    %187 = arith.addf %185, %186 : vector<32x128xf32>
    %cst_70 = arith.constant 0.000000e+00 : f32
    %188 = vector.broadcast %cst_70 : f32 to vector<32x128xf32>
    %189 = arith.maximumf %187, %188 : vector<32x128xf32>
    %190 = vector.extract_strided_slice %183 {offsets = [0, 0], sizes = [16, 128], strides = [1, 1]} : vector<32x128xf32> to vector<16x128xf32>
    %191 = vector.extract_strided_slice %189 {offsets = [0, 0], sizes = [16, 128], strides = [1, 1]} : vector<32x128xf32> to vector<16x128xf32>
    %c15_i32_71 = arith.constant 15 : i32
    %192 = vector.broadcast %c15_i32_71 : i32 to vector<16x1xi32>
    %193 = arith.cmpi slt, %2, %192 : vector<16x1xi32>
    %cst_72 = arith.constant 0.000000e+00 : f32
    %194 = vector.shape_cast %193 : vector<16x1xi1> to vector<16x1xi1>
    %195 = vector.broadcast %194 : vector<16x1xi1> to vector<16x128xi1>
    %196 = vector.broadcast %cst_72 : f32 to vector<16x128xf32>
    %197 = arith.select %195, %191, %196 : vector<16x128xi1>, vector<16x128xf32>
    %198 = vector.extract_strided_slice %183 {offsets = [16, 0], sizes = [16, 128], strides = [1, 1]} : vector<32x128xf32> to vector<16x128xf32>
    %c15_i32_73 = arith.constant 15 : i32
    %199 = vector.broadcast %c15_i32_73 : i32 to vector<16x1xi32>
    %200 = arith.cmpi slt, %2, %199 : vector<16x1xi32>
    %cst_74 = arith.constant 0.000000e+00 : f32
    %201 = vector.shape_cast %200 : vector<16x1xi1> to vector<16x1xi1>
    %202 = vector.broadcast %201 : vector<16x1xi1> to vector<16x128xi1>
    %203 = vector.broadcast %cst_74 : f32 to vector<16x128xf32>
    %204 = arith.select %202, %198, %203 : vector<16x128xi1>, vector<16x128xf32>
    %205 = vector.extract_strided_slice %189 {offsets = [16, 0], sizes = [16, 128], strides = [1, 1]} : vector<32x128xf32> to vector<16x128xf32>
    %c15_i32_75 = arith.constant 15 : i32
    %206 = vector.broadcast %c15_i32_75 : i32 to vector<16x1xi32>
    %207 = arith.cmpi slt, %2, %206 : vector<16x1xi32>
    %cst_76 = arith.constant 0.000000e+00 : f32
    %208 = vector.shape_cast %207 : vector<16x1xi1> to vector<16x1xi1>
    %209 = vector.broadcast %208 : vector<16x1xi1> to vector<16x128xi1>
    %210 = vector.broadcast %cst_76 : f32 to vector<16x128xf32>
    %211 = arith.select %209, %205, %210 : vector<16x128xi1>, vector<16x128xf32>
    %212 = tpu.concatenate %190, %197, %204, %211 in 0 : vector<16x128xf32>, vector<16x128xf32>, vector<16x128xf32>, vector<16x128xf32> -> vector<64x128xf32>
    %213 = arith.truncf %212 : vector<64x128xf32> to vector<64x128xbf16>
    %c6 = arith.constant 6 : index
    %c0_77 = arith.constant 0 : index
    %c0_78 = arith.constant 0 : index
    %c0_79 = arith.constant 0 : index
    %214 = vector.load %arg2[%c6, %c0_77, %c0_78, %c0_79] : memref<8x3x128x128xbf16, #tpu.memory_space<vmem>>, vector<1x3x128x128xbf16>
    %215 = vector.shape_cast %214 : vector<1x3x128x128xbf16> to vector<3x128x128xbf16>
    %c6_80 = arith.constant 6 : index
    %c0_81 = arith.constant 0 : index
    %c0_82 = arith.constant 0 : index
    %216 = vector.load %arg3[%c6_80, %c0_81, %c0_82] : memref<8x2x128xf32, #tpu.memory_space<vmem>>, vector<1x2x128xf32>
    %217 = vector.shape_cast %216 : vector<1x2x128xf32> to vector<2x128xf32>
    %218 = vector.extract_strided_slice %217 {offsets = [0, 0], sizes = [1, 128], strides = [1, 1]} : vector<2x128xf32> to vector<1x128xf32>
    %219 = vector.extract_strided_slice %217 {offsets = [1, 0], sizes = [1, 128], strides = [1, 1]} : vector<2x128xf32> to vector<1x128xf32>
    %cst_83 = arith.constant 0.000000e+00 : bf16
    %220 = vector.broadcast %cst_83 : bf16 to vector<1x128xbf16>
    %221 = vector.extract_strided_slice %213 {offsets = [16, 0], sizes = [48, 128], strides = [1, 1]} : vector<64x128xbf16> to vector<48x128xbf16>
    %222 = vector.extract_strided_slice %213 {offsets = [1, 0], sizes = [15, 128], strides = [1, 1]} : vector<64x128xbf16> to vector<15x128xbf16>
    %223 = tpu.concatenate %221, %222, %220 in 0 : vector<48x128xbf16>, vector<15x128xbf16>, vector<1x128xbf16> -> vector<64x128xbf16>
    %224 = vector.extract_strided_slice %215 {offsets = [1, 0, 0], sizes = [1, 128, 128], strides = [1, 1, 1]} : vector<3x128x128xbf16> to vector<1x128x128xbf16>
    %225 = vector.shape_cast %224 : vector<1x128x128xbf16> to vector<128x128xbf16>
    %cst_84 = arith.constant dense<0.000000e+00> : vector<64x128xf32>
    %226 = tpu.matmul %213, %225, %cst_84 {dimension_numbers = #tpu.dot_dimension_numbers<[1], [0], [0], [1], [0, 0, 1, 1], [], []>} : vector<64x128xbf16>, vector<128x128xbf16>, vector<64x128xf32> -> vector<64x128xf32>
    %227 = vector.extract_strided_slice %215 {offsets = [0, 0, 0], sizes = [1, 128, 128], strides = [1, 1, 1]} : vector<3x128x128xbf16> to vector<1x128x128xbf16>
    %228 = vector.shape_cast %227 : vector<1x128x128xbf16> to vector<128x128xbf16>
    %cst_85 = arith.constant dense<0.000000e+00> : vector<64x128xf32>
    %229 = tpu.matmul %223, %228, %cst_85 {dimension_numbers = #tpu.dot_dimension_numbers<[1], [0], [0], [1], [0, 0, 1, 1], [], []>} : vector<64x128xbf16>, vector<128x128xbf16>, vector<64x128xf32> -> vector<64x128xf32>
    %230 = vector.extract_strided_slice %215 {offsets = [2, 0, 0], sizes = [1, 128, 128], strides = [1, 1, 1]} : vector<3x128x128xbf16> to vector<1x128x128xbf16>
    %231 = vector.shape_cast %230 : vector<1x128x128xbf16> to vector<128x128xbf16>
    %cst_86 = arith.constant dense<0.000000e+00> : vector<64x128xf32>
    %232 = tpu.matmul %213, %231, %cst_86 {dimension_numbers = #tpu.dot_dimension_numbers<[1], [0], [0], [1], [0, 0, 1, 1], [], []>} : vector<64x128xbf16>, vector<128x128xbf16>, vector<64x128xf32> -> vector<64x128xf32>
    %233 = arith.addf %229, %232 : vector<64x128xf32>
    %234 = vector.broadcast %218 : vector<1x128xf32> to vector<64x128xf32>
    %235 = arith.mulf %226, %234 : vector<64x128xf32>
    %236 = vector.broadcast %219 : vector<1x128xf32> to vector<64x128xf32>
    %237 = arith.addf %235, %236 : vector<64x128xf32>
    %cst_87 = arith.constant 0.000000e+00 : f32
    %238 = vector.broadcast %cst_87 : f32 to vector<64x128xf32>
    %239 = arith.maximumf %237, %238 : vector<64x128xf32>
    %240 = vector.broadcast %218 : vector<1x128xf32> to vector<64x128xf32>
    %241 = arith.mulf %233, %240 : vector<64x128xf32>
    %242 = vector.broadcast %219 : vector<1x128xf32> to vector<64x128xf32>
    %243 = arith.addf %241, %242 : vector<64x128xf32>
    %cst_88 = arith.constant 0.000000e+00 : f32
    %244 = vector.broadcast %cst_88 : f32 to vector<64x128xf32>
    %245 = arith.maximumf %243, %244 : vector<64x128xf32>
    %246 = vector.extract_strided_slice %239 {offsets = [0, 0], sizes = [16, 128], strides = [1, 1]} : vector<64x128xf32> to vector<16x128xf32>
    %247 = vector.extract_strided_slice %245 {offsets = [0, 0], sizes = [16, 128], strides = [1, 1]} : vector<64x128xf32> to vector<16x128xf32>
    %c15_i32_89 = arith.constant 15 : i32
    %248 = vector.broadcast %c15_i32_89 : i32 to vector<16x1xi32>
    %249 = arith.cmpi slt, %2, %248 : vector<16x1xi32>
    %cst_90 = arith.constant 0.000000e+00 : f32
    %250 = vector.shape_cast %249 : vector<16x1xi1> to vector<16x1xi1>
    %251 = vector.broadcast %250 : vector<16x1xi1> to vector<16x128xi1>
    %252 = vector.broadcast %cst_90 : f32 to vector<16x128xf32>
    %253 = arith.select %251, %247, %252 : vector<16x128xi1>, vector<16x128xf32>
    %254 = vector.extract_strided_slice %239 {offsets = [16, 0], sizes = [16, 128], strides = [1, 1]} : vector<64x128xf32> to vector<16x128xf32>
    %c15_i32_91 = arith.constant 15 : i32
    %255 = vector.broadcast %c15_i32_91 : i32 to vector<16x1xi32>
    %256 = arith.cmpi slt, %2, %255 : vector<16x1xi32>
    %cst_92 = arith.constant 0.000000e+00 : f32
    %257 = vector.shape_cast %256 : vector<16x1xi1> to vector<16x1xi1>
    %258 = vector.broadcast %257 : vector<16x1xi1> to vector<16x128xi1>
    %259 = vector.broadcast %cst_92 : f32 to vector<16x128xf32>
    %260 = arith.select %258, %254, %259 : vector<16x128xi1>, vector<16x128xf32>
    %261 = vector.extract_strided_slice %245 {offsets = [16, 0], sizes = [16, 128], strides = [1, 1]} : vector<64x128xf32> to vector<16x128xf32>
    %c15_i32_93 = arith.constant 15 : i32
    %262 = vector.broadcast %c15_i32_93 : i32 to vector<16x1xi32>
    %263 = arith.cmpi slt, %2, %262 : vector<16x1xi32>
    %cst_94 = arith.constant 0.000000e+00 : f32
    %264 = vector.shape_cast %263 : vector<16x1xi1> to vector<16x1xi1>
    %265 = vector.broadcast %264 : vector<16x1xi1> to vector<16x128xi1>
    %266 = vector.broadcast %cst_94 : f32 to vector<16x128xf32>
    %267 = arith.select %265, %261, %266 : vector<16x128xi1>, vector<16x128xf32>
    %268 = vector.extract_strided_slice %239 {offsets = [32, 0], sizes = [16, 128], strides = [1, 1]} : vector<64x128xf32> to vector<16x128xf32>
    %c15_i32_95 = arith.constant 15 : i32
    %269 = vector.broadcast %c15_i32_95 : i32 to vector<16x1xi32>
    %270 = arith.cmpi slt, %2, %269 : vector<16x1xi32>
    %cst_96 = arith.constant 0.000000e+00 : f32
    %271 = vector.shape_cast %270 : vector<16x1xi1> to vector<16x1xi1>
    %272 = vector.broadcast %271 : vector<16x1xi1> to vector<16x128xi1>
    %273 = vector.broadcast %cst_96 : f32 to vector<16x128xf32>
    %274 = arith.select %272, %268, %273 : vector<16x128xi1>, vector<16x128xf32>
    %275 = vector.extract_strided_slice %245 {offsets = [32, 0], sizes = [16, 128], strides = [1, 1]} : vector<64x128xf32> to vector<16x128xf32>
    %c15_i32_97 = arith.constant 15 : i32
    %276 = vector.broadcast %c15_i32_97 : i32 to vector<16x1xi32>
    %277 = arith.cmpi slt, %2, %276 : vector<16x1xi32>
    %cst_98 = arith.constant 0.000000e+00 : f32
    %278 = vector.shape_cast %277 : vector<16x1xi1> to vector<16x1xi1>
    %279 = vector.broadcast %278 : vector<16x1xi1> to vector<16x128xi1>
    %280 = vector.broadcast %cst_98 : f32 to vector<16x128xf32>
    %281 = arith.select %279, %275, %280 : vector<16x128xi1>, vector<16x128xf32>
    %282 = vector.extract_strided_slice %239 {offsets = [48, 0], sizes = [16, 128], strides = [1, 1]} : vector<64x128xf32> to vector<16x128xf32>
    %c15_i32_99 = arith.constant 15 : i32
    %283 = vector.broadcast %c15_i32_99 : i32 to vector<16x1xi32>
    %284 = arith.cmpi slt, %2, %283 : vector<16x1xi32>
    %cst_100 = arith.constant 0.000000e+00 : f32
    %285 = vector.shape_cast %284 : vector<16x1xi1> to vector<16x1xi1>
    %286 = vector.broadcast %285 : vector<16x1xi1> to vector<16x128xi1>
    %287 = vector.broadcast %cst_100 : f32 to vector<16x128xf32>
    %288 = arith.select %286, %282, %287 : vector<16x128xi1>, vector<16x128xf32>
    %289 = vector.extract_strided_slice %245 {offsets = [48, 0], sizes = [16, 128], strides = [1, 1]} : vector<64x128xf32> to vector<16x128xf32>
    %c15_i32_101 = arith.constant 15 : i32
    %290 = vector.broadcast %c15_i32_101 : i32 to vector<16x1xi32>
    %291 = arith.cmpi slt, %2, %290 : vector<16x1xi32>
    %cst_102 = arith.constant 0.000000e+00 : f32
    %292 = vector.shape_cast %291 : vector<16x1xi1> to vector<16x1xi1>
    %293 = vector.broadcast %292 : vector<16x1xi1> to vector<16x128xi1>
    %294 = vector.broadcast %cst_102 : f32 to vector<16x128xf32>
    %295 = arith.select %293, %289, %294 : vector<16x128xi1>, vector<16x128xf32>
    %296 = tpu.concatenate %246, %253, %260, %267, %274, %281, %288, %295 in 0 : vector<16x128xf32>, vector<16x128xf32>, vector<16x128xf32>, vector<16x128xf32>, vector<16x128xf32>, vector<16x128xf32>, vector<16x128xf32>, vector<16x128xf32> -> vector<128x128xf32>
    %297 = arith.truncf %296 : vector<128x128xf32> to vector<128x128xbf16>
    %c7 = arith.constant 7 : index
    %c0_103 = arith.constant 0 : index
    %c0_104 = arith.constant 0 : index
    %c0_105 = arith.constant 0 : index
    %298 = vector.load %arg2[%c7, %c0_103, %c0_104, %c0_105] : memref<8x3x128x128xbf16, #tpu.memory_space<vmem>>, vector<1x3x128x128xbf16>
    %299 = vector.shape_cast %298 : vector<1x3x128x128xbf16> to vector<3x128x128xbf16>
    %c7_106 = arith.constant 7 : index
    %c0_107 = arith.constant 0 : index
    %c0_108 = arith.constant 0 : index
    %300 = vector.load %arg3[%c7_106, %c0_107, %c0_108] : memref<8x2x128xf32, #tpu.memory_space<vmem>>, vector<1x2x128xf32>
    %301 = vector.shape_cast %300 : vector<1x2x128xf32> to vector<2x128xf32>
    %302 = vector.extract_strided_slice %301 {offsets = [0, 0], sizes = [1, 128], strides = [1, 1]} : vector<2x128xf32> to vector<1x128xf32>
    %303 = vector.extract_strided_slice %301 {offsets = [1, 0], sizes = [1, 128], strides = [1, 1]} : vector<2x128xf32> to vector<1x128xf32>
    %cst_109 = arith.constant 0.000000e+00 : bf16
    %304 = vector.broadcast %cst_109 : bf16 to vector<1x128xbf16>
    %305 = vector.extract_strided_slice %297 {offsets = [16, 0], sizes = [112, 128], strides = [1, 1]} : vector<128x128xbf16> to vector<112x128xbf16>
    %306 = vector.extract_strided_slice %297 {offsets = [1, 0], sizes = [15, 128], strides = [1, 1]} : vector<128x128xbf16> to vector<15x128xbf16>
    %307 = tpu.concatenate %305, %306, %304 in 0 : vector<112x128xbf16>, vector<15x128xbf16>, vector<1x128xbf16> -> vector<128x128xbf16>
    %308 = vector.extract_strided_slice %297 {offsets = [112, 0], sizes = [15, 128], strides = [1, 1]} : vector<128x128xbf16> to vector<15x128xbf16>
    %309 = vector.extract_strided_slice %297 {offsets = [0, 0], sizes = [112, 128], strides = [1, 1]} : vector<128x128xbf16> to vector<112x128xbf16>
    %310 = tpu.concatenate %304, %308, %309 in 0 : vector<1x128xbf16>, vector<15x128xbf16>, vector<112x128xbf16> -> vector<128x128xbf16>
    %311 = vector.extract_strided_slice %299 {offsets = [0, 0, 0], sizes = [1, 128, 128], strides = [1, 1, 1]} : vector<3x128x128xbf16> to vector<1x128x128xbf16>
    %312 = vector.shape_cast %311 : vector<1x128x128xbf16> to vector<128x128xbf16>
    %cst_110 = arith.constant dense<0.000000e+00> : vector<128x128xf32>
    %313 = tpu.matmul %310, %312, %cst_110 {dimension_numbers = #tpu.dot_dimension_numbers<[1], [0], [0], [1], [0, 0, 1, 1], [], []>} : vector<128x128xbf16>, vector<128x128xbf16>, vector<128x128xf32> -> vector<128x128xf32>
    %314 = vector.extract_strided_slice %299 {offsets = [1, 0, 0], sizes = [1, 128, 128], strides = [1, 1, 1]} : vector<3x128x128xbf16> to vector<1x128x128xbf16>
    %315 = vector.shape_cast %314 : vector<1x128x128xbf16> to vector<128x128xbf16>
    %cst_111 = arith.constant dense<0.000000e+00> : vector<128x128xf32>
    %316 = tpu.matmul %297, %315, %cst_111 {dimension_numbers = #tpu.dot_dimension_numbers<[1], [0], [0], [1], [0, 0, 1, 1], [], []>} : vector<128x128xbf16>, vector<128x128xbf16>, vector<128x128xf32> -> vector<128x128xf32>
    %317 = arith.addf %313, %316 : vector<128x128xf32>
    %318 = vector.extract_strided_slice %299 {offsets = [2, 0, 0], sizes = [1, 128, 128], strides = [1, 1, 1]} : vector<3x128x128xbf16> to vector<1x128x128xbf16>
    %319 = vector.shape_cast %318 : vector<1x128x128xbf16> to vector<128x128xbf16>
    %cst_112 = arith.constant dense<0.000000e+00> : vector<128x128xf32>
    %320 = tpu.matmul %307, %319, %cst_112 {dimension_numbers = #tpu.dot_dimension_numbers<[1], [0], [0], [1], [0, 0, 1, 1], [], []>} : vector<128x128xbf16>, vector<128x128xbf16>, vector<128x128xf32> -> vector<128x128xf32>
    %321 = arith.addf %317, %320 : vector<128x128xf32>
    %322 = vector.broadcast %302 : vector<1x128xf32> to vector<128x128xf32>
    %323 = arith.mulf %321, %322 : vector<128x128xf32>
    %324 = vector.broadcast %303 : vector<1x128xf32> to vector<128x128xf32>
    %325 = arith.addf %323, %324 : vector<128x128xf32>
    %cst_113 = arith.constant 0.000000e+00 : f32
    %326 = vector.broadcast %cst_113 : f32 to vector<128x128xf32>
    %327 = arith.maximumf %325, %326 : vector<128x128xf32>
    %328 = arith.negf %327 : vector<128x128xf32>
    %329 = math.exp %328 : vector<128x128xf32>
    %cst_114 = arith.constant 1.000000e+00 : f32
    %330 = vector.broadcast %cst_114 : f32 to vector<128x128xf32>
    %331 = arith.addf %330, %329 : vector<128x128xf32>
    %332 = arith.divf %330, %331 : vector<128x128xf32>
    %333 = arith.truncf %332 : vector<128x128xf32> to vector<128x128xbf16>
    %c0_115 = arith.constant 0 : index
    %c0_116 = arith.constant 0 : index
    %c0_117 = arith.constant 0 : index
    %334 = vector.load %arg4[%c0_115, %c0_116, %c0_117] : memref<1x128x128xbf16, #tpu.memory_space<vmem>>, vector<1x128x128xbf16>
    %335 = vector.shape_cast %334 : vector<1x128x128xbf16> to vector<128x128xbf16>
    %336 = vector.shape_cast %333 : vector<128x128xbf16> to vector<1x128x128xbf16>
    tpu.vector_store %arg4[%c0_115, %c0_116, %c0_117], %336 {strides = array<i32>} : memref<1x128x128xbf16, #tpu.memory_space<vmem>>, vector<1x128x128xbf16>,
    return
  }
  func.func @transform_0(%arg0: i32) -> (i32, i32, i32) {
    %c0_i32 = arith.constant 0 : i32
    %c0_i32_0 = arith.constant 0 : i32
    %c0_i32_1 = arith.constant 0 : i32
    return %arg0, %c0_i32, %c0_i32_0 : i32, i32, i32
  }
  func.func @transform_1(%arg0: i32) -> (i32, i32, i32, i32) {
    %c0_i32 = arith.constant 0 : i32
    %c0_i32_0 = arith.constant 0 : i32
    %c0_i32_1 = arith.constant 0 : i32
    %c0_i32_2 = arith.constant 0 : i32
    %c0_i32_3 = arith.constant 0 : i32
    return %c0_i32, %c0_i32_0, %c0_i32_1, %c0_i32_2 : i32, i32, i32, i32
  }
  func.func @transform_2(%arg0: i32) -> (i32, i32, i32) {
    %c0_i32 = arith.constant 0 : i32
    %c0_i32_0 = arith.constant 0 : i32
    %c0_i32_1 = arith.constant 0 : i32
    %c0_i32_2 = arith.constant 0 : i32
    return %c0_i32, %c0_i32_0, %c0_i32_1 : i32, i32, i32
  }
  func.func @transform_3(%arg0: i32) -> (i32, i32, i32) {
    %c0_i32 = arith.constant 0 : i32
    %c0_i32_0 = arith.constant 0 : i32
    %c0_i32_1 = arith.constant 0 : i32
    return %arg0, %c0_i32, %c0_i32_0 : i32, i32, i32
  }
}

</mosaic_0001>

<bundles_post_ra>
// kernel: tpu_custom_call.1
= control target key start
LH: loop header
LB: loop body
LE: loop exit
PB: predicated region body
PF: predicated region fallthrough
CT: control target
= control target key end

     0   :  { %8 = vsyncpa [#allocation3], 0  ;;  %s6165_s0 = inlined_call_operand.hbm [shape: bf16[2,16,128], index: 0, kind: input, shape index: {}]   ;;  %s6166_s1 = inlined_call_operand.hbm [shape: bf16[8,3,128,128], index: 1, kind: input, shape index: {}]   ;;  %s6167_s2 = inlined_call_operand.hbm [shape: f32[8,2,128], index: 2, kind: input, shape index: {}]   ;;  %s6168_s3 = inlined_call_operand.hbm [shape: bf16[2,128,128], index: 3, kind: output, shape index: {}]  }
   0x1   :  { %10 = vsyncpa [#allocation3 + $0x1], 0 }
   0x2   :  { %11 = vsyncpa [#allocation6], 0 }
   0x3   :  { %12 = vsyncpa [#allocation4], 0 }
   0x4   :  { %14 = vsyncpa [#allocation4 + $0x1], 0  ;;  %s5494_s12 = smov 0   ;;  %s5496_s13 = smov 0  }
   0x5   :  { %s5498_s14 = smov 0   ;;  %s5500_s15 = smov 0  }
   0x6 LB: > { %s5515_s16 = sadd.s32 4294967295, %s5459_s15   ;;  %s3711_s17 = sadd.s32 4294967294, %s5459_s15   ;;  %s5459_s15 = sphi %s5500_s15, %s6194_s15   ;;  %s5455_s14 = sphi %s5498_s14, %s6193_s14   ;;  %s5451_s13 = sphi %s5496_s13, %s6192_s13   ;;  %s5447_s12 = sphi %s5494_s12, %s6191_s12  }
   0x7   : > { %p40_p0 = scmp.ne.s32.totalorder %s5451_s13, %s5447_s12  ;;  %p6169_p1 = scmp.eq.s32.totalorder %s5515_s16, 0 }
   0x8   : > { %p112_p3 = scmp.eq.s32.totalorder %s3711_s17, 1  ;;  %p3712_p5 = scmp.ge.s32.totalorder %s5459_s15, 1 }
   0x9   : > { %p5524_p4 = por %p6169_p1, %p40_p0  ;;  %p119_p7 = scmp.lt.s32.totalorder %s5459_s15, 3 }
   0xa   : > { %p5529_p6 = por %p112_p3, %p40_p0  ;;  %s5461_s21 = smov [#allocation5]  }
   0xb   : > { %s6172_s18 = scalar_select %p5524_p4, 1, 0 }
   0xc   : > { %s6173_s19 = scalar_select %p5529_p6, 1, 0 }
   0xd   : > { %p5534_p8 = pnand %p3712_p5, %p119_p7  ;;  %s131_s22 = sshll.u32 %s5461_s21, 4  ;;  %s5538_s22 = int_to_ptr.vmem [resolvable:$true] %s131_s22 }
   0xe   : > { %s5462_s24 = smov [#allocation7]   ;;  %s5303_s28 = scalar_lea.hbm %s6166_s1, 24576 }
   0xf   : > { %p4982_p9 = pneg %p5534_p8  ;;  %s144_s25 = sshll.u32 %s5462_s24, 4  ;;  %s5549_s25 = int_to_ptr.vmem [resolvable:$true] %s144_s25 }
  0x10   : > { %p5304_p12 = scmp.ne.s32.totalorder %s6166_s1, %s5303_s28  ;;  %p5310_p5 = scmp.lt.u32.totalorder %s5303_s28, %s6166_s1 }
  0x11   : > { %p5545_p11 = pnand %p4982_p9, %p6169_p1 }
  0x13   : > { %p5305_p13 = pneg %p5545_p11 }
  0x15   : > { %p5306_p0 = pnand %p5305_p13, %p5304_p12 }
  0x17   : > { %p5307_p3 = pneg %p5306_p0 }
  0x19   : > { %p5312_p7 = pnand %p5310_p5, %p5307_p3 }
  0x1b   : > { %5315 = shalt.err (!%p5312_p7)
}
  0x1c   : > { %s5316_s6 = scalar_lea.vmem %s5538_s22, 24576  ;;  %p5324_p2 = scmp.lt.s32.totalorder %s5538_s22, %s5538_s22 }
  0x1d   : > { %p5317_p9 = scmp.ne.s32.totalorder %s5538_s22, %s5316_s6  ;;  %p5325_p12 = scmp.lt.s32.totalorder %s5316_s6, %s5316_s6 }
  0x1f   : > { %p5319_p10 = pnand %p5317_p9, %p5305_p13  ;;  %p5326_p0 = por %p5325_p12, %p5324_p2 }
  0x21   : > { %p5320_p1 = pneg %p5319_p10 }
  0x23   : > { %p5327_p6 = pnand %p5326_p0, %p5320_p1 }
  0x25   : > { %5330 = shalt.err (!%p5327_p6)
}
  0x26   : > { %s5463_s7 = smov 64   ;;  %s5464_s8 = smov 4  }
  0x27   : > { %4985 = dma.hbm_to_vmem [thread:$0]  (!%p5545_p11), %s6166_s1, 24576, %s5538_s22, [#allocation6], %s5463_s7, %s5463_s7, %s5464_s8  }
  0x28   : > { %s5331_s21 = scalar_lea.hbm %s6167_s2, 256 }
  0x29   : > { %p5332_p1 = scmp.ne.s32.totalorder %s6167_s2, %s5331_s21  ;;  %p5338_p10 = scmp.lt.u32.totalorder %s5331_s21, %s6167_s2 }
  0x2b   : > { %p5334_p2 = pnand %p5332_p1, %p5305_p13 }
  0x2d   : > { %p5335_p6 = pneg %p5334_p2 }
  0x2f   : > { %p5340_p3 = pnand %p5338_p10, %p5335_p6 }
  0x31   : > { %5343 = shalt.err (!%p5340_p3)
}
  0x32   : > { %s5344_s22 = scalar_lea.vmem %s5549_s25, 256  ;;  %p5352_p12 = scmp.lt.s32.totalorder %s5549_s25, %s5549_s25 }
  0x33   : > { %p5345_p5 = scmp.ne.s32.totalorder %s5549_s25, %s5344_s22  ;;  %p5353_p0 = scmp.lt.s32.totalorder %s5344_s22, %s5344_s22 }
  0x35   : > { %p5347_p7 = pnand %p5345_p5, %p5305_p13  ;;  %p5354_p1 = por %p5353_p0, %p5352_p12 }
  0x37   : > { %p5348_p9 = pneg %p5347_p7 }
  0x39   : > { %p5355_p2 = pnand %p5354_p1, %p5348_p9 }
  0x3b   : > { %5358 = shalt.err (!%p5355_p2)
}
  0x3c   : > { %s5465_s29 = smov 32   ;;  %s5466_s30 = smov 2  }
  0x3d   : > { %4988 = dma.hbm_to_vmem [thread:$0]  (!%p5545_p11), %s6167_s2, 256, %s5549_s25, [#allocation6], %s5465_s29, %s5465_s29, %s5466_s30  }
  0x3e   : > { %s5607_s6 = sadd.s32 1, %s5459_s15   ;;  %s27_s10 = sadd.s32 1, %s5455_s14 }
  0x3f   : > { %s24_s9 = ssub.s32 %s5459_s15, %s5607_s6  ;;  %p34_p6 = scmp.ne.s32.totalorder %s5455_s14, %s5451_s13 }
  0x40   : > { %p25_p13 = scmp.eq.s32.totalorder %s24_s9, 0  ;;  %p35_p10 = scmp.eq.s32.totalorder %s5459_s15, 0 }
  0x41   : > { %p6176_p5 = scmp.eq.s32.totalorder %s5515_s16, 1  ;;  %p4999_p9 = scmp.lt.s32.totalorder %s5459_s15, 2 }
  0x42   : > { %s5616_s11 = scalar_select %p25_p13, %s5455_s14, %s27_s10  }
  0x43   : > { %p36_p3 = por %p35_p10, %p34_p6  ;;  %p5620_p7 = por %p6176_p5, %p34_p6 }
  0x44   : > { %s158_s23 = sand.u32 1, %s5455_s14   ;;  %s4050_s25 = sshll.u32 %s5459_s15, 7 }
  0x45   : > { %s6177_s17 = scalar_select %p5620_p7, 1, 0 }
  0x46   : > { %s3716_s21 = sshll.u32 %s158_s23, 3  ;;  %s5630_s27 = scalar_lea.hbm %s6165_s0, %s4050_s25 }
  0x47   : > { %s162_s28 = scalar_lea.vmem [#allocation2], %s3716_s21  ;;  %p5634_p11 = pnand %p4999_p9, %p36_p3 }
  0x48   : > { %s169_s22 = sshll.u32 %s162_s28, 4  ;;  %s5638_s30 = scalar_lea.sflag [#allocation3], %s158_s23  ;;  %s5632_s22 = int_to_ptr.vmem [resolvable:$true] %s169_s22 }
  0x49   : > { %s5359_s4 = scalar_lea.hbm %s5630_s27, 128  ;;  %p5361_p0 = pneg %p5634_p11 }
  0x4a   : > { %p5360_p12 = scmp.ne.s32.totalorder %s5630_s27, %s5359_s4  ;;  %s5364_s10 = scalar_lea.hbm %s6165_s0, 256 }
  0x4b   : > { %p5365_p13 = scmp.lt.u32.totalorder %s5630_s27, %s6165_s0  ;;  %p5366_p6 = scmp.lt.u32.totalorder %s5364_s10, %s5359_s4 }
  0x4c   : > { %p5362_p1 = pnand %p5361_p0, %p5360_p12  ;;  %p5368_p3 = scmp.lt.u32.totalorder %s5359_s4, %s5630_s27 }
  0x4d   : > { %p5367_p10 = por %p5366_p6, %p5365_p13 }
  0x4e   : > { %p5363_p2 = pneg %p5362_p1 }
  0x4f   : > { %p5369_p5 = por %p5368_p3, %p5367_p10 }
  0x51   : > { %p5370_p9 = pnand %p5369_p5, %p5363_p2 }
  0x53   : > { %5373 = shalt.err (!%p5370_p9)
}
  0x54   : > { %s5374_s23 = scalar_lea.vmem %s5632_s22, 128  ;;  %s5467_s24 = smov [#allocation2]  }
  0x55   : > { %p5375_p12 = scmp.ne.s32.totalorder %s5632_s22, %s5374_s23  ;;  %s5379_s26 = sshll.u32 %s5467_s24, 4  ;;  %s5380_s26 = int_to_ptr.vmem [resolvable:$false] %s5379_s26 }
  0x56   : > { %s5381_s28 = scalar_lea.vmem %s5380_s26, 256  ;;  %p5382_p4 = scmp.lt.s32.totalorder %s5632_s22, %s5380_s26 }
  0x57   : > { %p5377_p1 = pnand %p5375_p12, %p5361_p0  ;;  %p5383_p13 = scmp.lt.s32.totalorder %s5381_s28, %s5374_s23 }
  0x59   : > { %p5378_p7 = pneg %p5377_p1  ;;  %p5384_p6 = por %p5383_p13, %p5382_p4 }
  0x5b   : > { %p5385_p10 = pnand %p5384_p6, %p5378_p7 }
  0x5d   : > { %5388 = shalt.err (!%p5385_p10)
}
  0x5e   : > { %4992 = dma.hbm_to_vmem [thread:$0]  (!%p5634_p11), %s5630_s27, 128, %s5632_s22, %s5638_s30, %s5463_s7, %s5463_s7, %s5464_s8  }
  0x5f   : > { %181 = sbr.rel (%p5534_p8) target bundleno = 2435 (0x983), region = 32  ;;  %s5672_s4 = sand.u32 (!%p5534_p8), 1, %s5451_s13  }
  0x60   : > { %s3720_s5 = sshll.u32 (!%p5534_p8), %s5672_s4, 3  ;;  %s184_s9 = scalar_lea.sflag (!%p5534_p8), [#allocation3], %s5672_s4 }
  0x61   : > { %s187_s10 = scalar_lea.vmem (!%p5534_p8), [#allocation2], %s3720_s5  ;;  %p6179_p4 = scmp.ne.s32.totalorder (!%p5534_p8), %s6172_s18, 0 }
  0x66   : > { %5434 = dma.done.wait (%p6179_p4), %s184_s9, 128  }
  0x67   : > { %5436 = vsyncadd (%p6179_p4), %s184_s9, 4294967168  ;;  %p6180_p7 = scmp.eq.s32.totalorder %s5515_s16, 0 }
  0x69   : > { %5438 = dma.done.wait (%p6180_p7), [#allocation6], 24832   ;;  %p6181_p11 = pmov %p6180_p7 }
  0x6a   : > { %v5468_v0 = vmov 0.0   ;;  %vm5469_vm0 = vmmov 0   ;;  %v5046_v1 = vld [vmem:[#allocation5] sm:$0xff]   ;;  %v5047_v2 = vld [vmem:[#allocation5 + $0x8] sm:$0xff]   ;;  %v5048_v3 = vld [vmem:[#allocation5 + $0x10] sm:$0xff]   ;;  %vm293_vm3 = vcmask 1040384   ;;  %v221_v54 = vlaneseq }
  0x6b   : > { %5440 = vsyncadd (%p6181_p11), [#allocation6], 4294942464  ;;  %4384 = vmatprep.subr.bf16.mxu0 %v5468_v0  ;;  %4364 = vmatprep.subr.bf16.mxu1 %v5468_v0  ;;  %v5054_v4 = vld [vmem:[#allocation5 + $0x40] sm:$0xff]   ;;  %v5049_v5 = vld [vmem:[#allocation5 + $0x18] sm:$0xff]   ;;  %vm294_vm1 = vsmask.f32 256 }
  0x6c   : > { %4400 = vmatprep.mubr.msk.bf16.mxu0 %vm5469_vm0, %v5468_v0  ;;  %4380 = vmatprep.mubr.msk.bf16.mxu1 %vm5469_vm0, %v5468_v0  ;;  %v5055_v6 = vld [vmem:[%s187_s10] sm:$0xff]   ;;  %v5057_v7 = vld [vmem:[#allocation5 + $0x48] sm:$0xff]   ;;  %v5050_v8 = vld [vmem:[#allocation5 + $0x20] sm:$0xff]   ;;  %vm287_vm2 = vsmask.f32 7424  ;;  %vm286_vm4 = vcmask 1047552  }
  0x6d   : > { %4385 = vmatpush3.bf16.msra.mxu0 %v5046_v1  ;;  %4365 = vmatpush3.bf16.msra.mxu1 %v5054_v4  ;;  %v5059_v9 = vld [vmem:[#allocation5 + $0x50] sm:$0xff]   ;;  %v279_v10 = vshrl.u32 %v5055_v6, 16  ;;  %v5051_v11 = vld [vmem:[#allocation5 + $0x28] sm:$0xff]   ;;  %v5061_v12 = vld [vmem:[#allocation5 + $0x58] sm:$0xff]   ;;  %v281_v13 = vshll.u32 %v5055_v6, 16  ;;  %v5748_v55 = vshrl.u32 %v221_v54, 7 }
  0x6e   : > { %4386 = vmatprep.subr.bf16.mxu0 %v5468_v0  ;;  %4366 = vmatprep.subr.bf16.mxu1 %v5468_v0  ;;  %v5052_v15 = vld [vmem:[#allocation5 + $0x30] sm:$0xff]   ;;  %v5063_v17 = vld [vmem:[#allocation5 + $0x60] sm:$0xff]   ;;  %vm5700_vm5 = vmand %vm293_vm3, %vm294_vm1  ;;  %vm5470_vm8 = vmmov 1   ;;  %s3723_s18 = sshll.u32 %s5672_s4, 6  ;;  %s4067_s7 = sshll.u32 %s5515_s16, 10 }
  0x6f   : > { %v290_v14 = vrot.slane %v279_v10, 7  ;;  %v283_v16 = vrot.slane %v281_v13, 1  ;;  %vm5706_vm6 = vmand %vm286_vm4, %vm287_vm2  ;;  %v5053_v21 = vld [vmem:[#allocation5 + $0x38] sm:$0xff]   ;;  %v5065_v23 = vld [vmem:[#allocation5 + $0x68] sm:$0xff]   ;;  %v5751_v56 = vsub.s32 0, %v5748_v55  ;;  %v5754_v58 = vsub.s32 1, %v5748_v55  ;;  %s6117_s29 = scalar_lea.hbm %s6168_s3, %s4067_s7 }
  0x70   : > { %v5056_v25 = vld [vmem:[#allocation5 + $0x80] sm:$0xff]   ;;  %v5067_v26 = vld [vmem:[#allocation5 + $0x70] sm:$0xff]   ;;  %v5058_v28 = vld [vmem:[#allocation5 + $0x88] sm:$0xff]   ;;  %s6104_s20 = scalar_lea.vmem [#allocation8], %s3723_s18  ;;  %s3606_s30 = scalar_lea.sflag [#allocation4], %s5672_s4 }
  0x71   : > { %4387 = vmatpush3.bf16.msra.mxu0 %v5047_v2  ;;  %4367 = vmatpush3.bf16.msra.mxu1 %v5057_v7  ;;  %v291_v19 = vor.u32 %v290_v14, %v281_v13  ;;  %v284_v22 = vor.u32 %v283_v16, %v279_v10  ;;  %v5069_v29 = vld [vmem:[#allocation5 + $0x78] sm:$0xff]   ;;  %v5060_v30 = vld [vmem:[#allocation5 + $0x90] sm:$0xff]   ;;  %v5071_v31 = vld [vmem:[#allocation5 + $0x100] sm:$0xff]   ;;  %s3619_s8 = sshll.u32 %s6104_s20, 4  ;;  %p6188_p0 = scmp.ne.s32.totalorder %s6177_s17, 0  ;;  %s6119_s8 = int_to_ptr.vmem [resolvable:$true] %s3619_s8 }
  0x72   : > { %4388 = vmatprep.subr.bf16.mxu0 %v5468_v0  ;;  %4368 = vmatprep.subr.bf16.mxu1 %v5468_v0  ;;  %v5062_v32 = vld [vmem:[#allocation5 + $0x98] sm:$0xff]   ;;  %v5072_v33 = vld [vmem:[#allocation5 + $0x108] sm:$0xff]   ;;  %v5064_v34 = vld [vmem:[#allocation5 + $0xa0] sm:$0xff]   ;;  %s5389_s16 = scalar_lea.vmem %s6119_s8, 1024  ;;  %s5471_s21 = smov [#allocation8]  }
  0x73   : > { %v296_v24 = vsel %vm5700_vm5, 0, %v291_v19  ;;  %v289_v27 = vsel %vm5706_vm6, %v284_v22, 0  ;;  %v5073_v35 = vld [vmem:[#allocation5 + $0x110] sm:$0xff]   ;;  %v5066_v36 = vld [vmem:[#allocation5 + $0xa8] sm:$0xff]   ;;  %v5074_v37 = vld [vmem:[#allocation5 + $0x118] sm:$0xff]   ;;  %p5390_p8 = scmp.ne.s32.totalorder %s6119_s8, %s5389_s16  ;;  %s5393_s25 = sshll.u32 %s5471_s21, 4  ;;  %s5394_s25 = int_to_ptr.vmem [resolvable:$false] %s5393_s25 }
  0x74   : > { %v5068_v38 = vld [vmem:[#allocation5 + $0xb0] sm:$0xff]   ;;  %v5070_v39 = vld [vmem:[#allocation5 + $0xb8] sm:$0xff]   ;;  %v5075_v40 = vld [vmem:[#allocation5 + $0x120] sm:$0xff]   ;;  %s5395_s23 = scalar_lea.vmem %s5394_s25, 2048  ;;  %p5396_p5 = scmp.lt.s32.totalorder %s6119_s8, %s5394_s25 }
  0x75   : > { %4389 = vmatpush3.bf16.msra.mxu0 %v5048_v3  ;;  %4369 = vmatpush3.bf16.msra.mxu1 %v5059_v9  ;;  %v5076_v41 = vld [vmem:[#allocation5 + $0x128] sm:$0xff]   ;;  %v5077_v42 = vld [vmem:[#allocation5 + $0x130] sm:$0xff]   ;;  %v5078_v43 = vld [vmem:[#allocation5 + $0x138] sm:$0xff]   ;;  %p5391_p2 = pnand %p5390_p8, %p6188_p0  ;;  %p5397_p9 = scmp.lt.s32.totalorder %s5395_s23, %s5389_s16 }
  0x76   : > { %4390 = vmatprep.subr.bf16.mxu0 %v5468_v0  ;;  %4370 = vmatprep.subr.bf16.mxu1 %v5468_v0  ;;  %v5095_v44 = vld [vmem:[#allocation5 + $0x1c0] sm:$0xff]   ;;  %v5096_v45 = vld [vmem:[#allocation5 + $0x1c8] sm:$0xff]   ;;  %v5097_v46 = vld [vmem:[#allocation5 + $0x1d0] sm:$0xff]  }
  0x77   : > { %v5098_v47 = vld [vmem:[#allocation5 + $0x1d8] sm:$0xff]   ;;  %v5099_v48 = vld [vmem:[#allocation5 + $0x1e0] sm:$0xff]   ;;  %v5100_v49 = vld [vmem:[#allocation5 + $0x1e8] sm:$0xff]   ;;  %p5392_p3 = pneg %p5391_p2  ;;  %p5398_p12 = por %p5397_p9, %p5396_p5 }
  0x78   : > { %v272_v57 = vld [vmem:[#allocation7] sm:$0x3]  ;;  %v5081_v13 = vld [vmem:[#allocation5 + $0xd0] sm:$0xff]   ;;  %v5082_v14 = vld [vmem:[#allocation5 + $0xd8] sm:$0xff]  }
  0x79   : > { %4391 = vmatpush3.bf16.msra.mxu0 %v5049_v5  ;;  %4371 = vmatpush3.bf16.msra.mxu1 %v5061_v12  ;;  %v570_v59 = vrot.slane %v272_v57, %v5751_v56  ;;  %v576_v62 = vrot.slane %v272_v57, %v5754_v58  ;;  %v5079_v10 = vld [vmem:[#allocation5 + $0xc0] sm:$0xff]   ;;  %v5080_v12 = vld [vmem:[#allocation5 + $0xc8] sm:$0xff]   ;;  %v5085_v19 = vld [vmem:[#allocation5 + $0xf0] sm:$0xff]   ;;  %p5399_p1 = pnand %p5398_p12, %p5392_p3 }
  0x7a   : > { %4392 = vmatprep.subr.bf16.mxu0 %v5468_v0  ;;  %4372 = vmatprep.subr.bf16.mxu1 %v5468_v0  ;;  %v5084_v16 = vld [vmem:[#allocation5 + $0xe8] sm:$0xff]   ;;  %v5086_v22 = vld [vmem:[#allocation5 + $0xf8] sm:$0xff]  }
  0x7b   : > { %v5234_v18 = vld [vmem:[#allocation5 + $0x5d8] sm:$0xff]  }
  0x7d   : > { %4393 = vmatpush3.bf16.msra.mxu0 %v5050_v8  ;;  %4373 = vmatpush3.bf16.msra.mxu1 %v5063_v17 }
  0x7e   : > { %4394 = vmatprep.subr.bf16.mxu0 %v5468_v0  ;;  %4374 = vmatprep.subr.bf16.mxu1 %v5468_v0 }
  0x81   : > { %4395 = vmatpush3.bf16.msra.mxu0 %v5051_v11  ;;  %4375 = vmatpush3.bf16.msra.mxu1 %v5065_v23 }
  0x82   : > { %4396 = vmatprep.subr.bf16.mxu0 %v5468_v0  ;;  %4376 = vmatprep.subr.bf16.mxu1 %v5468_v0 }
  0x85   : > { %4397 = vmatpush3.bf16.msra.mxu0 %v5052_v15  ;;  %4377 = vmatpush3.bf16.msra.mxu1 %v5067_v26  ;;  %v5083_v15 = vld [vmem:[#allocation5 + $0xe0] sm:$0xff]  }
  0x86   : > { %4398 = vmatprep.subr.bf16.mxu0 %v5468_v0  ;;  %4378 = vmatprep.subr.bf16.mxu1 %v5468_v0 }
  0x89   : > { %4399 = vmatpush3.bf16.msra.mxu0 %v5053_v21  ;;  %4379 = vmatpush3.bf16.msra.mxu1 %v5069_v29  ;;  %v5090_v29 = vld [vmem:[#allocation5 + $0x158] sm:$0xff]  }
  0x8a   : > { %4404 = vmatprep.subr.bf16.mxu0 %v5468_v0  ;;  %4424 = vmatprep.subr.bf16.mxu1 %v5468_v0 }
  0x8c   : > { %4401 = vmatmul.mubr.bf16.vlgmr.msra.gmra.mrb[0].mxu0 %v296_v24  ;;  %4381 = vmatmul.mubr.bf16.vlgmr.msra.gmra.mrb[0].mxu1 %v5055_v6 }
  0x8d   : > { %4405 = vmatpush3.bf16.msra.mxu0 %v5056_v25  ;;  %4420 = vmatprep.mubr.msk.bf16.mxu0 %vm5469_vm0, %v5468_v0  ;;  %v5087_v25 = vld [vmem:[#allocation5 + $0x140] sm:$0xff]  }
  0x8e   : > { %4406 = vmatprep.subr.bf16.mxu0 %v5468_v0  ;;  %4425 = vmatpush3.bf16.msra.mxu1 %v5071_v31  ;;  %v5092_v31 = vld [vmem:[#allocation5 + $0x168] sm:$0xff]  }
  0x8f   : > { %4426 = vmatprep.subr.bf16.mxu1 %v5468_v0  ;;  %4440 = vmatprep.mubr.msk.bf16.mxu1 %vm5469_vm0, %v5468_v0 }
  0x91   : > { %4407 = vmatpush3.bf16.msra.mxu0 %v5058_v28  ;;  %v5089_v28 = vld [vmem:[#allocation5 + $0x150] sm:$0xff]  }
  0x92   : > { %4408 = vmatprep.subr.bf16.mxu0 %v5468_v0  ;;  %4427 = vmatpush3.bf16.msra.mxu1 %v5072_v33 }
  0x93   : > { %4428 = vmatprep.subr.bf16.mxu1 %v5468_v0 }
  0x95   : > { %4409 = vmatpush3.bf16.msra.mxu0 %v5060_v30  ;;  %v5091_v30 = vld [vmem:[#allocation5 + $0x160] sm:$0xff]  }
  0x96   : > { %4410 = vmatprep.subr.bf16.mxu0 %v5468_v0  ;;  %4429 = vmatpush3.bf16.msra.mxu1 %v5073_v35 }
  0x97   : > { %4430 = vmatprep.subr.bf16.mxu1 %v5468_v0 }
  0x99   : > { %4411 = vmatpush3.bf16.msra.mxu0 %v5062_v32  ;;  %v5093_v32 = vld [vmem:[#allocation5 + $0x170] sm:$0xff]  }
  0x9a   : > { %4412 = vmatprep.subr.bf16.mxu0 %v5468_v0  ;;  %4431 = vmatpush3.bf16.msra.mxu1 %v5074_v37  ;;  %v5101_v37 = vld [vmem:[#allocation5 + $0x1f0] sm:$0xff]  }
  0x9b   : > { %4432 = vmatprep.subr.bf16.mxu1 %v5468_v0 }
  0x9d   : > { %4413 = vmatpush3.bf16.msra.mxu0 %v5064_v34  ;;  %v5094_v34 = vld [vmem:[#allocation5 + $0x178] sm:$0xff]  }
  0x9e   : > { %4414 = vmatprep.subr.bf16.mxu0 %v5468_v0  ;;  %4433 = vmatpush3.bf16.msra.mxu1 %v5075_v40  ;;  %v5120_v40 = vld [vmem:[#allocation5 + $0x288] sm:$0xff]  }
  0x9f   : > { %4434 = vmatprep.subr.bf16.mxu1 %v5468_v0 }
  0xa1   : > { %4415 = vmatpush3.bf16.msra.mxu0 %v5066_v36 }
  0xa2   : > { %4416 = vmatprep.subr.bf16.mxu0 %v5468_v0  ;;  %4435 = vmatpush3.bf16.msra.mxu1 %v5076_v41  ;;  %v5121_v41 = vld [vmem:[#allocation5 + $0x290] sm:$0xff]  }
  0xa3   : > { %4436 = vmatprep.subr.bf16.mxu1 %v5468_v0 }
  0xa5   : > { %4417 = vmatpush3.bf16.msra.mxu0 %v5068_v38  ;;  %v5102_v38 = vld [vmem:[#allocation5 + $0x1f8] sm:$0xff]  }
  0xa6   : > { %4418 = vmatprep.subr.bf16.mxu0 %v5468_v0  ;;  %4437 = vmatpush3.bf16.msra.mxu1 %v5077_v42  ;;  %v5122_v42 = vld [vmem:[#allocation5 + $0x298] sm:$0xff]  }
  0xa7   : > { %4438 = vmatprep.subr.bf16.mxu1 %v5468_v0 }
  0xa9   : > { %4419 = vmatpush3.bf16.msra.mxu0 %v5070_v39  ;;  %v5119_v39 = vld [vmem:[#allocation5 + $0x280] sm:$0xff]  }
  0xaa   : > { %4484 = vmatprep.subr.bf16.mxu0 %v5468_v0  ;;  %4439 = vmatpush3.bf16.msra.mxu1 %v5078_v43  ;;  %v5123_v43 = vld [vmem:[#allocation5 + $0x2a0] sm:$0xff]  }
  0xab   : > { %4444 = vmatprep.subr.bf16.mxu1 %v5468_v0 }
  0xac   : > { %4421 = vmatmul.mubr.bf16.vlgmr.msra.gmra.mrb[0].mxu0 %v289_v27  ;;  %v5088_v27 = vld [vmem:[#allocation5 + $0x148] sm:$0xff]  }
  0xad   : > { %4500 = vmatprep.mubr.msk.bf16.mxu0 %vm5469_vm0, %v5468_v0  ;;  %4485 = vmatpush3.bf16.msra.mxu0 %v5095_v44  ;;  %v5124_v44 = vld [vmem:[#allocation5 + $0x2a8] sm:$0xff]  }
  0xae   : > { %4486 = vmatprep.subr.bf16.mxu0 %v5468_v0 }
  0xb1   : > { %4487 = vmatpush3.bf16.msra.mxu0 %v5096_v45  ;;  %v632_v45 = vld [vmem:[#allocation7 + $0x2] sm:$0x3] }
  0xb2   : > { %4488 = vmatprep.subr.bf16.mxu0 %v5468_v0 }
  0xb5   : > { %4489 = vmatpush3.bf16.msra.mxu0 %v5097_v46  ;;  %v918_v46 = vrot.slane %v632_v45, %v5751_v56 }
  0xb6   : > { %4490 = vmatprep.subr.bf16.mxu0 %v5468_v0 }
  0xb9   : > { %4491 = vmatpush3.bf16.msra.mxu0 %v5098_v47  ;;  %v924_v47 = vrot.slane %v632_v45, %v5754_v58  ;;  %v5127_v45 = vld [vmem:[#allocation5 + $0x240] sm:$0xff]  }
  0xba   : > { %4492 = vmatprep.subr.bf16.mxu0 %v5468_v0 }
  0xbd   : > { %4493 = vmatpush3.bf16.msra.mxu0 %v5099_v48 }
  0xbe   : > { %4494 = vmatprep.subr.bf16.mxu0 %v5468_v0 }
  0xc1   : > { %4495 = vmatpush3.bf16.msra.mxu0 %v5100_v49 }
  0xc2   : > { %4496 = vmatprep.subr.bf16.mxu0 %v5468_v0 }
  0xc5   : > { %4497 = vmatpush3.bf16.msra.mxu0 %v5101_v37 }
  0xc6   : > { %4498 = vmatprep.subr.bf16.mxu0 %v5468_v0 }
  0xc9   : > { %4499 = vmatpush3.bf16.msra.mxu0 %v5102_v38 }
  0xca   : > { %4504 = vmatprep.subr.bf16.mxu0 %v5468_v0 }
 0x15f   : > { %v380_v50 = vpop.f32.mrb[0].mxu1 }
 0x160   : > { %v4382_v51 = vpop.f32.mrb[1].mxu1 }
 0x161   : > { %v383_v52 = vpop.f32.mrb[2].mxu1 }
 0x162   : > { %v4383_v53 = vpop.f32.mrb[3].mxu1 }
 0x17f   : > { %v558_v60 = vpop.f32.mrb[0].mxu0 }
 0x180   : > { %v4892_v61 = vadd.f32 %v558_v60, %v380_v50  ;;  %v4422_v63 = vpop.f32.mrb[1].mxu0 }
 0x181   : > { %v561_v1 = vpop.f32.mrb[2].mxu0  ;;  %v5104_v63 = vld [vmem:[#allocation5 + $0x188] sm:$0xff]  }
 0x182   : > { %v571_v2 = vmul.f32 %v4892_v61, %v570_v59  ;;  %v4893_v3 = vadd.f32 %v561_v1, %v383_v52  ;;  %v4423_v4 = vpop.f32.mrb[3].mxu0  ;;  %v5103_v61 = vld [vmem:[#allocation5 + $0x180] sm:$0xff]   ;;  %v5105_v1 = vld [vmem:[#allocation5 + $0x190] sm:$0xff]  }
 0x183   : > { %v5108_v4 = vld [vmem:[#allocation5 + $0x1a8] sm:$0xff]  }
 0x184   : > { %v577_v5 = vadd.f32 %v576_v62, %v571_v2  ;;  %v572_v6 = vmul.f32 %v4893_v3, %v570_v59  ;;  %v5106_v2 = vld [vmem:[#allocation5 + $0x198] sm:$0xff]   ;;  %v5107_v3 = vld [vmem:[#allocation5 + $0x1a0] sm:$0xff]  }
 0x186   : > { %v578_v7 = vadd.f32 %v576_v62, %v572_v6  ;;  %v579_v8 = vmax.f32 %v577_v5, 0.0  ;;  %v5109_v6 = vld [vmem:[#allocation5 + $0x1b0] sm:$0xff]  }
 0x188   : > { %v580_v9 = vmax.f32 %v578_v7, 0.0 }
 0x18a   : > { %v581_v11 = vpack.c.bf16 %v580_v9, %v579_v8  ;;  %v5110_v8 = vld [vmem:[#allocation5 + $0x1b8] sm:$0xff]  }
 0x18c   : > { %4441 = vmatmul.mubr.bf16.vlgmr.msra.gmra.mrb[4].mxu1 %v581_v11  ;;  %v634_v17 = vshrl.u32 %v581_v11, 16  ;;  %v636_v23 = vshll.u32 %v581_v11, 16  ;;  %v5111_v11 = vld [vmem:[#allocation5 + $0x200] sm:$0xff]  }
 0x18d   : > { %4445 = vmatpush3.bf16.msra.mxu1 %v5079_v10  ;;  %4460 = vmatprep.mubr.msk.bf16.mxu1 %vm5469_vm0, %v5468_v0 }
 0x18e   : > { %4446 = vmatprep.subr.bf16.mxu1 %v5468_v0  ;;  %v642_v21 = vrot.slane %v634_v17, 7  ;;  %v638_v33 = vrot.slane %v636_v23, 1 }
 0x190   : > { %v643_v24 = vor.u32 %v642_v21, %v636_v23  ;;  %v639_v35 = vor.u32 %v638_v33, %v634_v17  ;;  %v5116_v17 = vld [vmem:[#allocation5 + $0x228] sm:$0xff]  }
 0x191   : > { %4447 = vmatpush3.bf16.msra.mxu1 %v5080_v12 }
 0x192   : > { %4448 = vmatprep.subr.bf16.mxu1 %v5468_v0  ;;  %v645_v26 = vsel %vm5700_vm5, 0, %v643_v24  ;;  %v641_v36 = vsel %vm5706_vm6, %v639_v35, 0 }
 0x195   : > { %4449 = vmatpush3.bf16.msra.mxu1 %v5081_v13  ;;  %v5112_v13 = vld [vmem:[#allocation5 + $0x208] sm:$0xff]  }
 0x196   : > { %4450 = vmatprep.subr.bf16.mxu1 %v5468_v0 }
 0x199   : > { %4451 = vmatpush3.bf16.msra.mxu1 %v5082_v14  ;;  %v5113_v14 = vld [vmem:[#allocation5 + $0x210] sm:$0xff]  }
 0x19a   : > { %4452 = vmatprep.subr.bf16.mxu1 %v5468_v0 }
 0x19d   : > { %4453 = vmatpush3.bf16.msra.mxu1 %v5083_v15  ;;  %v5114_v15 = vld [vmem:[#allocation5 + $0x218] sm:$0xff]  }
 0x19e   : > { %4454 = vmatprep.subr.bf16.mxu1 %v5468_v0 }
 0x1a1   : > { %4455 = vmatpush3.bf16.msra.mxu1 %v5084_v16  ;;  %v5115_v16 = vld [vmem:[#allocation5 + $0x220] sm:$0xff]  }
 0x1a2   : > { %4456 = vmatprep.subr.bf16.mxu1 %v5468_v0 }
 0x1a5   : > { %4457 = vmatpush3.bf16.msra.mxu1 %v5085_v19  ;;  %v5117_v19 = vld [vmem:[#allocation5 + $0x230] sm:$0xff]  }
 0x1a6   : > { %4458 = vmatprep.subr.bf16.mxu1 %v5468_v0 }
 0x1a9   : > { %4459 = vmatpush3.bf16.msra.mxu1 %v5086_v22  ;;  %v5118_v22 = vld [vmem:[#allocation5 + $0x238] sm:$0xff]  }
 0x1aa   : > { %4464 = vmatprep.subr.bf16.mxu1 %v5468_v0 }
 0x1ac   : > { %4461 = vmatmul.mubr.bf16.vlgmr.msra.gmra.mrb[4].mxu1 %v645_v26  ;;  %v5126_v26 = vld [vmem:[#allocation5 + $0x2b8] sm:$0xff]  }
 0x1ad   : > { %4465 = vmatpush3.bf16.msra.mxu1 %v5087_v25  ;;  %4480 = vmatprep.mubr.msk.bf16.mxu1 %vm5469_vm0, %v5468_v0  ;;  %v5125_v25 = vld [vmem:[#allocation5 + $0x2b0] sm:$0xff]  }
 0x1ae   : > { %4466 = vmatprep.subr.bf16.mxu1 %v5468_v0 }
 0x1b1   : > { %4467 = vmatpush3.bf16.msra.mxu1 %v5088_v27  ;;  %v5144_v27 = vld [vmem:[#allocation5 + $0x340] sm:$0xff]  }
 0x1b2   : > { %4468 = vmatprep.subr.bf16.mxu1 %v5468_v0 }
 0x1b5   : > { %4469 = vmatpush3.bf16.msra.mxu1 %v5089_v28  ;;  %v5146_v28 = vld [vmem:[#allocation5 + $0x348] sm:$0xff]  }
 0x1b6   : > { %4470 = vmatprep.subr.bf16.mxu1 %v5468_v0 }
 0x1b9   : > { %4471 = vmatpush3.bf16.msra.mxu1 %v5090_v29  ;;  %v5148_v29 = vld [vmem:[#allocation5 + $0x350] sm:$0xff]  }
 0x1ba   : > { %4472 = vmatprep.subr.bf16.mxu1 %v5468_v0 }
 0x1bd   : > { %4473 = vmatpush3.bf16.msra.mxu1 %v5091_v30  ;;  %v5150_v30 = vld [vmem:[#allocation5 + $0x358] sm:$0xff]  }
 0x1be   : > { %4474 = vmatprep.subr.bf16.mxu1 %v5468_v0 }
 0x1c1   : > { %4475 = vmatpush3.bf16.msra.mxu1 %v5092_v31  ;;  %v5152_v31 = vld [vmem:[#allocation5 + $0x360] sm:$0xff]  }
 0x1c2   : > { %4476 = vmatprep.subr.bf16.mxu1 %v5468_v0 }
 0x1c5   : > { %4477 = vmatpush3.bf16.msra.mxu1 %v5093_v32  ;;  %v980_v32 = vld [vmem:[#allocation7 + $0x4] sm:$0x3] }
 0x1c6   : > { %4478 = vmatprep.subr.bf16.mxu1 %v5468_v0  ;;  %v1266_v33 = vrot.slane %v980_v32, %v5751_v56 }
 0x1c9   : > { %4479 = vmatpush3.bf16.msra.mxu1 %v5094_v34  ;;  %v1272_v34 = vrot.slane %v980_v32, %v5754_v58 }
 0x1ca   : > { %4544 = vmatprep.subr.bf16.mxu1 %v5468_v0 }
 0x1cc   : > { %4481 = vmatmul.mubr.bf16.vlgmr.msra.gmra.mrb[4].mxu1 %v641_v36 }
 0x1cd   : > { %4560 = vmatprep.mubr.msk.bf16.mxu1 %vm5469_vm0, %v5468_v0  ;;  %4545 = vmatpush3.bf16.msra.mxu1 %v5119_v39 }
 0x1ce   : > { %4546 = vmatprep.subr.bf16.mxu1 %v5468_v0 }
 0x1d1   : > { %4547 = vmatpush3.bf16.msra.mxu1 %v5120_v40 }
 0x1d2   : > { %4548 = vmatprep.subr.bf16.mxu1 %v5468_v0 }
 0x1d5   : > { %4549 = vmatpush3.bf16.msra.mxu1 %v5121_v41 }
 0x1d6   : > { %4550 = vmatprep.subr.bf16.mxu1 %v5468_v0 }
 0x1d9   : > { %4551 = vmatpush3.bf16.msra.mxu1 %v5122_v42 }
 0x1da   : > { %4552 = vmatprep.subr.bf16.mxu1 %v5468_v0 }
 0x1dd   : > { %4553 = vmatpush3.bf16.msra.mxu1 %v5123_v43 }
 0x1de   : > { %4554 = vmatprep.subr.bf16.mxu1 %v5468_v0 }
 0x1e1   : > { %4555 = vmatpush3.bf16.msra.mxu1 %v5124_v44 }
 0x1e2   : > { %4556 = vmatprep.subr.bf16.mxu1 %v5468_v0 }
 0x1e5   : > { %4557 = vmatpush3.bf16.msra.mxu1 %v5125_v25 }
 0x1e6   : > { %4558 = vmatprep.subr.bf16.mxu1 %v5468_v0 }
 0x1e9   : > { %4559 = vmatpush3.bf16.msra.mxu1 %v5126_v26 }
 0x1ea   : > { %4564 = vmatprep.subr.bf16.mxu1 %v5468_v0 }
 0x29f   : > { %v906_v48 = vpop.f32.mrb[4].mxu1 }
 0x2a0   : > { %v919_v49 = vmul.f32 %v918_v46, %v906_v48  ;;  %v4482_v50 = vpop.f32.mrb[5].mxu1  ;;  %v5129_v48 = vld [vmem:[#allocation5 + $0x250] sm:$0xff]  }
 0x2a1   : > { %v909_v51 = vpop.f32.mrb[6].mxu1  ;;  %v5131_v50 = vld [vmem:[#allocation5 + $0x260] sm:$0xff]  }
 0x2a2   : > { %v925_v52 = vadd.f32 %v924_v47, %v919_v49  ;;  %v920_v53 = vmul.f32 %v918_v46, %v909_v51  ;;  %v4483_v54 = vpop.f32.mrb[7].mxu1  ;;  %v5130_v49 = vld [vmem:[#allocation5 + $0x258] sm:$0xff]   ;;  %v5132_v51 = vld [vmem:[#allocation5 + $0x268] sm:$0xff]  }
 0x2a4   : > { %v926_v57 = vadd.f32 %v924_v47, %v920_v53  ;;  %v927_v59 = vmax.f32 %v925_v52, 0.0  ;;  %v5128_v47 = vld [vmem:[#allocation5 + $0x248] sm:$0xff]   ;;  %v5133_v53 = vld [vmem:[#allocation5 + $0x270] sm:$0xff]  }
 0x2a6   : > { %v928_v60 = vmax.f32 %v926_v57, 0.0  ;;  %v5134_v57 = vld [vmem:[#allocation5 + $0x278] sm:$0xff]  }
 0x2a8   : > { %v929_v62 = vpack.c.bf16 %v928_v60, %v927_v59 }
 0x2aa   : > { %4501 = vmatmul.mubr.bf16.vlgmr.msra.gmra.mrb[4].mxu0 %v929_v62  ;;  %v982_v5 = vshrl.u32 %v929_v62, 16  ;;  %v984_v9 = vshll.u32 %v929_v62, 16 }
 0x2ab   : > { %4505 = vmatpush3.bf16.msra.mxu0 %v5103_v61  ;;  %4520 = vmatprep.mubr.msk.bf16.mxu0 %vm5469_vm0, %v5468_v0  ;;  %v5135_v61 = vld [vmem:[#allocation5 + $0x2c0] sm:$0xff]  }
 0x2ac   : > { %4506 = vmatprep.subr.bf16.mxu0 %v5468_v0  ;;  %v990_v7 = vrot.slane %v982_v5, 7  ;;  %v986_v21 = vrot.slane %v984_v9, 1 }
 0x2ae   : > { %v991_v10 = vor.u32 %v990_v7, %v984_v9  ;;  %v987_v23 = vor.u32 %v986_v21, %v982_v5  ;;  %v5141_v5 = vld [vmem:[#allocation5 + $0x2f0] sm:$0xff]   ;;  %v5142_v7 = vld [vmem:[#allocation5 + $0x2f8] sm:$0xff]   ;;  %v5143_v9 = vld [vmem:[#allocation5 + $0x380] sm:$0xff]  }
 0x2af   : > { %4507 = vmatpush3.bf16.msra.mxu0 %v5104_v63  ;;  %v5136_v63 = vld [vmem:[#allocation5 + $0x2c8] sm:$0xff]   ;;  %v5157_v21 = vld [vmem:[#allocation5 + $0x3b8] sm:$0xff]  }
 0x2b0   : > { %4508 = vmatprep.subr.bf16.mxu0 %v5468_v0  ;;  %v993_v12 = vsel %vm5700_vm5, 0, %v991_v10  ;;  %v989_v24 = vsel %vm5706_vm6, %v987_v23, 0  ;;  %v1328_v23 = vld [vmem:[#allocation7 + $0x6] sm:$0x3] }
 0x2b1   : > { %v1620_v25 = vrot.slane %v1328_v23, %v5754_v58 }
 0x2b3   : > { %4509 = vmatpush3.bf16.msra.mxu0 %v5105_v1  ;;  %v5137_v1 = vld [vmem:[#allocation5 + $0x2d0] sm:$0xff]  }
 0x2b4   : > { %4510 = vmatprep.subr.bf16.mxu0 %v5468_v0 }
 0x2b7   : > { %4511 = vmatpush3.bf16.msra.mxu0 %v5106_v2  ;;  %v5138_v2 = vld [vmem:[#allocation5 + $0x2d8] sm:$0xff]  }
 0x2b8   : > { %4512 = vmatprep.subr.bf16.mxu0 %v5468_v0 }
 0x2bb   : > { %4513 = vmatpush3.bf16.msra.mxu0 %v5107_v3  ;;  %v5139_v3 = vld [vmem:[#allocation5 + $0x2e0] sm:$0xff]  }
 0x2bc   : > { %4514 = vmatprep.subr.bf16.mxu0 %v5468_v0 }
 0x2bf   : > { %4515 = vmatpush3.bf16.msra.mxu0 %v5108_v4  ;;  %v5140_v4 = vld [vmem:[#allocation5 + $0x2e8] sm:$0xff]  }
 0x2c0   : > { %4516 = vmatprep.subr.bf16.mxu0 %v5468_v0 }
 0x2c3   : > { %4517 = vmatpush3.bf16.msra.mxu0 %v5109_v6 }
 0x2c4   : > { %4518 = vmatprep.subr.bf16.mxu0 %v5468_v0 }
 0x2c7   : > { %4519 = vmatpush3.bf16.msra.mxu0 %v5110_v8 }
 0x2c8   : > { %4524 = vmatprep.subr.bf16.mxu0 %v5468_v0 }
 0x2ca   : > { %4521 = vmatmul.mubr.bf16.vlgmr.msra.gmra.mrb[4].mxu0 %v993_v12  ;;  %v5147_v12 = vld [vmem:[#allocation5 + $0x390] sm:$0xff]  }
 0x2cb   : > { %4525 = vmatpush3.bf16.msra.mxu0 %v5111_v11  ;;  %4540 = vmatprep.mubr.msk.bf16.mxu0 %vm5469_vm0, %v5468_v0  ;;  %v5145_v11 = vld [vmem:[#allocation5 + $0x388] sm:$0xff]  }
 0x2cc   : > { %4526 = vmatprep.subr.bf16.mxu0 %v5468_v0 }
 0x2cf   : > { %4527 = vmatpush3.bf16.msra.mxu0 %v5112_v13  ;;  %v5149_v13 = vld [vmem:[#allocation5 + $0x398] sm:$0xff]  }
 0x2d0   : > { %4528 = vmatprep.subr.bf16.mxu0 %v5468_v0 }
 0x2d3   : > { %4529 = vmatpush3.bf16.msra.mxu0 %v5113_v14  ;;  %v5151_v14 = vld [vmem:[#allocation5 + $0x3a0] sm:$0xff]  }
 0x2d4   : > { %4530 = vmatprep.subr.bf16.mxu0 %v5468_v0 }
 0x2d7   : > { %4531 = vmatpush3.bf16.msra.mxu0 %v5114_v15  ;;  %v5153_v15 = vld [vmem:[#allocation5 + $0x3a8] sm:$0xff]  }
 0x2d8   : > { %4532 = vmatprep.subr.bf16.mxu0 %v5468_v0 }
 0x2db   : > { %4533 = vmatpush3.bf16.msra.mxu0 %v5115_v16  ;;  %v5154_v16 = vld [vmem:[#allocation5 + $0x368] sm:$0xff]  }
 0x2dc   : > { %4534 = vmatprep.subr.bf16.mxu0 %v5468_v0 }
 0x2df   : > { %4535 = vmatpush3.bf16.msra.mxu0 %v5116_v17  ;;  %v5155_v17 = vld [vmem:[#allocation5 + $0x3b0] sm:$0xff]  }
 0x2e0   : > { %4536 = vmatprep.subr.bf16.mxu0 %v5468_v0 }
 0x2e3   : > { %4537 = vmatpush3.bf16.msra.mxu0 %v5117_v19  ;;  %v5156_v19 = vld [vmem:[#allocation5 + $0x370] sm:$0xff]  }
 0x2e4   : > { %4538 = vmatprep.subr.bf16.mxu0 %v5468_v0 }
 0x2e7   : > { %4539 = vmatpush3.bf16.msra.mxu0 %v5118_v22  ;;  %v5158_v22 = vld [vmem:[#allocation5 + $0x378] sm:$0xff]  }
 0x2e8   : > { %4604 = vmatprep.subr.bf16.mxu0 %v5468_v0 }
 0x2ea   : > { %4541 = vmatmul.mubr.bf16.vlgmr.msra.gmra.mrb[4].mxu0 %v989_v24  ;;  %v1614_v24 = vrot.slane %v1328_v23, %v5751_v56 }
 0x2eb   : > { %4620 = vmatprep.mubr.msk.bf16.mxu0 %vm5469_vm0, %v5468_v0  ;;  %4605 = vmatpush3.bf16.msra.mxu0 %v5144_v27 }
 0x2ec   : > { %4606 = vmatprep.subr.bf16.mxu0 %v5468_v0 }
 0x2ef   : > { %4607 = vmatpush3.bf16.msra.mxu0 %v5146_v28 }
 0x2f0   : > { %4608 = vmatprep.subr.bf16.mxu0 %v5468_v0 }
 0x2f3   : > { %4609 = vmatpush3.bf16.msra.mxu0 %v5148_v29 }
 0x2f4   : > { %4610 = vmatprep.subr.bf16.mxu0 %v5468_v0 }
 0x2f7   : > { %4611 = vmatpush3.bf16.msra.mxu0 %v5150_v30 }
 0x2f8   : > { %4612 = vmatprep.subr.bf16.mxu0 %v5468_v0 }
 0x2fb   : > { %4613 = vmatpush3.bf16.msra.mxu0 %v5152_v31 }
 0x2fc   : > { %4614 = vmatprep.subr.bf16.mxu0 %v5468_v0 }
 0x2ff   : > { %4615 = vmatpush3.bf16.msra.mxu0 %v5154_v16 }
 0x300   : > { %4616 = vmatprep.subr.bf16.mxu0 %v5468_v0 }
 0x303   : > { %4617 = vmatpush3.bf16.msra.mxu0 %v5156_v19 }
 0x304   : > { %4618 = vmatprep.subr.bf16.mxu0 %v5468_v0 }
 0x307   : > { %4619 = vmatpush3.bf16.msra.mxu0 %v5158_v22 }
 0x3bd   : > { %v1254_v35 = vpop.f32.mrb[4].mxu0 }
 0x3be   : > { %v1267_v36 = vmul.f32 %v1266_v33, %v1254_v35  ;;  %v4542_v37 = vpop.f32.mrb[5].mxu0 }
 0x3bf   : > { %v1257_v38 = vpop.f32.mrb[6].mxu0 }
 0x3c0   : > { %v1273_v39 = vadd.f32 %v1272_v34, %v1267_v36  ;;  %v1268_v40 = vmul.f32 %v1266_v33, %v1257_v38  ;;  %v4543_v41 = vpop.f32.mrb[7].mxu0  ;;  %v5159_v36 = vld [vmem:[#allocation5 + $0x300] sm:$0xff]   ;;  %v5160_v38 = vld [vmem:[#allocation5 + $0x308] sm:$0xff]  }
 0x3c1   : > { %v5163_v41 = vld [vmem:[#allocation5 + $0x320] sm:$0xff]  }
 0x3c2   : > { %v1274_v42 = vadd.f32 %v1272_v34, %v1268_v40  ;;  %v1275_v43 = vmax.f32 %v1273_v39, 0.0  ;;  %v5161_v39 = vld [vmem:[#allocation5 + $0x310] sm:$0xff]   ;;  %v5162_v40 = vld [vmem:[#allocation5 + $0x318] sm:$0xff]  }
 0x3c4   : > { %v1276_v44 = vmax.f32 %v1274_v42, 0.0  ;;  %v5164_v42 = vld [vmem:[#allocation5 + $0x328] sm:$0xff]  }
 0x3c6   : > { %v1277_v46 = vpack.c.bf16 %v1276_v44, %v1275_v43  ;;  %v5165_v44 = vld [vmem:[#allocation5 + $0x330] sm:$0xff]  }
 0x3c8   : > { %4561 = vmatmul.mubr.bf16.vlgmr.msra.gmra.mrb[8].mxu1 %v1277_v46  ;;  %v1330_v52 = vshrl.u32 %v1277_v46, 16  ;;  %v1332_v59 = vshll.u32 %v1277_v46, 16  ;;  %v5166_v46 = vld [vmem:[#allocation5 + $0x338] sm:$0xff]  }
 0x3c9   : > { %4565 = vmatpush3.bf16.msra.mxu1 %v5127_v45  ;;  %4580 = vmatprep.mubr.msk.bf16.mxu1 %vm5469_vm0, %v5468_v0 }
 0x3ca   : > { %4566 = vmatprep.subr.bf16.mxu1 %v5468_v0  ;;  %v1338_v54 = vrot.slane %v1330_v52, 7  ;;  %v1334_v6 = vrot.slane %v1332_v59, 1 }
 0x3cc   : > { %v1339_v60 = vor.u32 %v1338_v54, %v1332_v59  ;;  %v1335_v8 = vor.u32 %v1334_v6, %v1330_v52  ;;  %v5169_v52 = vld [vmem:[#allocation5 + $0x410] sm:$0xff]   ;;  %v5171_v54 = vld [vmem:[#allocation5 + $0x420] sm:$0xff]   ;;  %v5174_v59 = vld [vmem:[#allocation5 + $0x438] sm:$0xff]  }
 0x3cd   : > { %4567 = vmatpush3.bf16.msra.mxu1 %v5128_v47 }
 0x3ce   : > { %4568 = vmatprep.subr.bf16.mxu1 %v5468_v0  ;;  %v1341_v62 = vsel %vm5700_vm5, 0, %v1339_v60  ;;  %v1337_v10 = vsel %vm5706_vm6, %v1335_v8, 0  ;;  %v5175_v60 = vld [vmem:[#allocation5 + $0x440] sm:$0xff]  }
 0x3d1   : > { %4569 = vmatpush3.bf16.msra.mxu1 %v5129_v48 }
 0x3d2   : > { %4570 = vmatprep.subr.bf16.mxu1 %v5468_v0 }
 0x3d5   : > { %4571 = vmatpush3.bf16.msra.mxu1 %v5130_v49 }
 0x3d6   : > { %4572 = vmatprep.subr.bf16.mxu1 %v5468_v0 }
 0x3d9   : > { %4573 = vmatpush3.bf16.msra.mxu1 %v5131_v50  ;;  %v5167_v50 = vld [vmem:[#allocation5 + $0x400] sm:$0xff]  }
 0x3da   : > { %4574 = vmatprep.subr.bf16.mxu1 %v5468_v0  ;;  %4664 = vmatprep.subr.bf16.mxu0 %v5167_v50 }
 0x3dd   : > { %4575 = vmatpush3.bf16.msra.mxu1 %v5132_v51  ;;  %v5168_v51 = vld [vmem:[#allocation5 + $0x408] sm:$0xff]  }
 0x3de   : > { %4576 = vmatprep.subr.bf16.mxu1 %v5468_v0 }
 0x3e1   : > { %4577 = vmatpush3.bf16.msra.mxu1 %v5133_v53  ;;  %v5170_v53 = vld [vmem:[#allocation5 + $0x418] sm:$0xff]  }
 0x3e2   : > { %4578 = vmatprep.subr.bf16.mxu1 %v5468_v0 }
 0x3e5   : > { %4579 = vmatpush3.bf16.msra.mxu1 %v5134_v57  ;;  %v5173_v57 = vld [vmem:[#allocation5 + $0x430] sm:$0xff]  }
 0x3e6   : > { %4584 = vmatprep.subr.bf16.mxu1 %v5468_v0 }
 0x3e8   : > { %4581 = vmatmul.mubr.bf16.vlgmr.msra.gmra.mrb[8].mxu1 %v1341_v62 }
 0x3e9   : > { %4585 = vmatpush3.bf16.msra.mxu1 %v5135_v61  ;;  %4600 = vmatprep.mubr.msk.bf16.mxu1 %vm5469_vm0, %v5468_v0  ;;  %v1676_v61 = vld [vmem:[#allocation7 + $0x8] sm:$0x3] }
 0x3ea   : > { %4586 = vmatprep.subr.bf16.mxu1 %v5468_v0  ;;  %v1956_v62 = vrot.slane %v1676_v61, %v5751_v56 }
 0x3ed   : > { %4587 = vmatpush3.bf16.msra.mxu1 %v5136_v63  ;;  %v1962_v63 = vrot.slane %v1676_v61, %v5754_v58 }
 0x3ee   : > { %4588 = vmatprep.subr.bf16.mxu1 %v5468_v0 }
 0x3f1   : > { %4589 = vmatpush3.bf16.msra.mxu1 %v5137_v1 }
 0x3f2   : > { %4590 = vmatprep.subr.bf16.mxu1 %v5468_v0 }
 0x3f5   : > { %4591 = vmatpush3.bf16.msra.mxu1 %v5138_v2 }
 0x3f6   : > { %4592 = vmatprep.subr.bf16.mxu1 %v5468_v0 }
 0x3f9   : > { %4593 = vmatpush3.bf16.msra.mxu1 %v5139_v3 }
 0x3fa   : > { %4594 = vmatprep.subr.bf16.mxu1 %v5468_v0 }
 0x3fd   : > { %4595 = vmatpush3.bf16.msra.mxu1 %v5140_v4 }
 0x3fe   : > { %4596 = vmatprep.subr.bf16.mxu1 %v5468_v0 }
 0x401   : > { %4597 = vmatpush3.bf16.msra.mxu1 %v5141_v5 }
 0x402   : > { %4598 = vmatprep.subr.bf16.mxu1 %v5468_v0 }
 0x405   : > { %4599 = vmatpush3.bf16.msra.mxu1 %v5142_v7 }
 0x406   : > { %4624 = vmatprep.subr.bf16.mxu1 %v5468_v0 }
 0x408   : > { %4601 = vmatmul.mubr.bf16.vlgmr.msra.gmra.mrb[8].mxu1 %v1337_v10 }
 0x409   : > { %4625 = vmatpush3.bf16.msra.mxu1 %v5143_v9  ;;  %4640 = vmatprep.mubr.msk.bf16.mxu1 %vm5469_vm0, %v5468_v0 }
 0x40a   : > { %4626 = vmatprep.subr.bf16.mxu1 %v5468_v0 }
 0x40d   : > { %4627 = vmatpush3.bf16.msra.mxu1 %v5145_v11 }
 0x40e   : > { %4628 = vmatprep.subr.bf16.mxu1 %v5468_v0 }
 0x411   : > { %4629 = vmatpush3.bf16.msra.mxu1 %v5147_v12 }
 0x412   : > { %4630 = vmatprep.subr.bf16.mxu1 %v5468_v0 }
 0x415   : > { %4631 = vmatpush3.bf16.msra.mxu1 %v5149_v13  ;;  %v5884_v13 = vadd.s32 8, %v5748_v55 }
 0x416   : > { %4632 = vmatprep.subr.bf16.mxu1 %v5468_v0 }
 0x417   : > { %vm1974_vm7 = vcmp.lt.s32.totalorder %v5884_v13, 15  ;;  %v5227_v13 = vld [vmem:[#allocation5 + $0x560] sm:$0xff]  }
 0x418   : > { %vm5889_vm9 = vmpackc.low %vm1974_vm7, %vm5470_vm8 }
 0x419   : > { %4633 = vmatpush3.bf16.msra.mxu1 %v5151_v14 }
 0x41a   : > { %4634 = vmatprep.subr.bf16.mxu1 %v5468_v0 }
 0x41d   : > { %4635 = vmatpush3.bf16.msra.mxu1 %v5153_v15 }
 0x41e   : > { %4636 = vmatprep.subr.bf16.mxu1 %v5468_v0 }
 0x421   : > { %4637 = vmatpush3.bf16.msra.mxu1 %v5155_v17 }
 0x422   : > { %4638 = vmatprep.subr.bf16.mxu1 %v5468_v0 }
 0x425   : > { %4639 = vmatpush3.bf16.msra.mxu1 %v5157_v21 }
 0x426   : > { %4644 = vmatprep.subr.bf16.mxu1 %v5468_v0 }
 0x4db   : > { %v1602_v26 = vpop.f32.mrb[8].mxu1 }
 0x4dc   : > { %v1615_v27 = vmul.f32 %v1614_v24, %v1602_v26  ;;  %v4602_v28 = vpop.f32.mrb[9].mxu1  ;;  %v5176_v26 = vld [vmem:[#allocation5 + $0x448] sm:$0xff]  }
 0x4dd   : > { %v1605_v29 = vpop.f32.mrb[10].mxu1  ;;  %v5178_v28 = vld [vmem:[#allocation5 + $0x458] sm:$0xff]  }
 0x4de   : > { %v1621_v30 = vadd.f32 %v1620_v25, %v1615_v27  ;;  %v1616_v31 = vmul.f32 %v1614_v24, %v1605_v29  ;;  %v4603_v32 = vpop.f32.mrb[11].mxu1  ;;  %v5177_v27 = vld [vmem:[#allocation5 + $0x450] sm:$0xff]   ;;  %v5179_v29 = vld [vmem:[#allocation5 + $0x460] sm:$0xff]  }
 0x4df   : > { %v5182_v32 = vld [vmem:[#allocation5 + $0x478] sm:$0xff]  }
 0x4e0   : > { %v1622_v33 = vadd.f32 %v1620_v25, %v1616_v31  ;;  %v1623_v34 = vmax.f32 %v1621_v30, 0.0  ;;  %v5180_v30 = vld [vmem:[#allocation5 + $0x468] sm:$0xff]   ;;  %v5181_v31 = vld [vmem:[#allocation5 + $0x470] sm:$0xff]  }
 0x4e2   : > { %v1624_v35 = vmax.f32 %v1622_v33, 0.0  ;;  %v5183_v33 = vld [vmem:[#allocation5 + $0x3c0] sm:$0xff]  }
 0x4e4   : > { %v1625_v37 = vpack.c.bf16 %v1624_v35, %v1623_v34  ;;  %v5184_v34 = vld [vmem:[#allocation5 + $0x3c8] sm:$0xff]   ;;  %v5185_v35 = vld [vmem:[#allocation5 + $0x3d0] sm:$0xff]  }
 0x4e6   : > { %4621 = vmatmul.mubr.bf16.vlgmr.msra.gmra.mrb[8].mxu0 %v1625_v37  ;;  %4641 = vmatmul.mubr.bf16.vlgmr.msra.gmra.mrb[12].mxu1 %v1625_v37  ;;  %v1680_v43 = vshll.u32 %v1625_v37, 16  ;;  %v1678_v47 = vshrl.u32 %v1625_v37, 16  ;;  %v5187_v37 = vld [vmem:[#allocation5 + $0x3e0] sm:$0xff]  }
 0x4e7   : > { %4645 = vmatpush3.bf16.msra.mxu1 %v5159_v36  ;;  %4660 = vmatprep.mubr.msk.bf16.mxu1 %vm5469_vm0, %v5468_v0  ;;  %v5186_v36 = vld [vmem:[#allocation5 + $0x3d8] sm:$0xff]  }
 0x4e8   : > { %4646 = vmatprep.subr.bf16.mxu1 %v5468_v0  ;;  %v1682_v45 = vrot.slane %v1680_v43, 1  ;;  %4665 = vmatpush3.bf16.msra.mxu0 %v5167_v50  ;;  %v5195_v50 = vld [vmem:[#allocation5 + $0x4e0] sm:$0xff]  }
 0x4e9   : > { %4666 = vmatprep.subr.bf16.mxu0 %v5168_v51 }
 0x4ea   : > { %v1683_v48 = vor.u32 %v1682_v45, %v1678_v47  ;;  %v5192_v47 = vld [vmem:[#allocation5 + $0x4c8] sm:$0xff]  }
 0x4eb   : > { %4647 = vmatpush3.bf16.msra.mxu1 %v5160_v38  ;;  %v5188_v38 = vld [vmem:[#allocation5 + $0x3e8] sm:$0xff]  }
 0x4ec   : > { %4648 = vmatprep.subr.bf16.mxu1 %v5468_v0  ;;  %v1685_v49 = vsel %vm5706_vm6, %v1683_v48, 0  ;;  %4667 = vmatpush3.bf16.msra.mxu0 %v5168_v51  ;;  %v5193_v48 = vld [vmem:[#allocation5 + $0x4d0] sm:$0xff]   ;;  %v5196_v51 = vld [vmem:[#allocation5 + $0x4e8] sm:$0xff]  }
 0x4ed   : > { %4668 = vmatprep.subr.bf16.mxu0 %v5169_v52 }
 0x4ef   : > { %4649 = vmatpush3.bf16.msra.mxu1 %v5161_v39  ;;  %v5189_v39 = vld [vmem:[#allocation5 + $0x3f0] sm:$0xff]  }
 0x4f0   : > { %4650 = vmatprep.subr.bf16.mxu1 %v5468_v0  ;;  %4669 = vmatpush3.bf16.msra.mxu0 %v5169_v52  ;;  %v5197_v52 = vld [vmem:[#allocation5 + $0x4f0] sm:$0xff]  }
 0x4f1   : > { %4670 = vmatprep.subr.bf16.mxu0 %v5170_v53 }
 0x4f3   : > { %4651 = vmatpush3.bf16.msra.mxu1 %v5162_v40 }
 0x4f4   : > { %4652 = vmatprep.subr.bf16.mxu1 %v5468_v0  ;;  %4671 = vmatpush3.bf16.msra.mxu0 %v5170_v53  ;;  %v5198_v53 = vld [vmem:[#allocation5 + $0x4f8] sm:$0xff]  }
 0x4f5   : > { %4672 = vmatprep.subr.bf16.mxu0 %v5171_v54 }
 0x4f7   : > { %4653 = vmatpush3.bf16.msra.mxu1 %v5163_v41  ;;  %v5190_v41 = vld [vmem:[#allocation5 + $0x3f8] sm:$0xff]  }
 0x4f8   : > { %4654 = vmatprep.subr.bf16.mxu1 %v5468_v0  ;;  %4673 = vmatpush3.bf16.msra.mxu0 %v5171_v54  ;;  %v5199_v54 = vld [vmem:[#allocation5 + $0x500] sm:$0xff]  }
 0x4fb   : > { %4655 = vmatpush3.bf16.msra.mxu1 %v5164_v42 }
 0x4fc   : > { %4656 = vmatprep.subr.bf16.mxu1 %v5468_v0 }
 0x4ff   : > { %4657 = vmatpush3.bf16.msra.mxu1 %v5165_v44 }
 0x500   : > { %4658 = vmatprep.subr.bf16.mxu1 %v5468_v0  ;;  %v5172_v0 = vld [vmem:[#allocation5 + $0x428] sm:$0xff]  }
 0x501   : > { %4674 = vmatprep.subr.bf16.mxu0 %v5172_v0 }
 0x502   : > { %4675 = vmatpush3.bf16.msra.mxu0 %v5172_v0  ;;  %v2033_v0 = vld [vmem:[#allocation7 + $0xa] sm:$0x3] }
 0x503   : > { %4659 = vmatpush3.bf16.msra.mxu1 %v5166_v46  ;;  %4676 = vmatprep.subr.bf16.mxu0 %v5173_v57  ;;  %v5191_v46 = vld [vmem:[#allocation5 + $0x4c0] sm:$0xff]  }
 0x504   : > { %4724 = vmatprep.subr.bf16.mxu1 %v5191_v46 }
 0x506   : > { %4661 = vmatmul.mubr.bf16.vlgmr.msra.gmra.mrb[12].mxu1 %v1685_v49  ;;  %4677 = vmatpush3.bf16.msra.mxu0 %v5173_v57  ;;  %v5194_v49 = vld [vmem:[#allocation5 + $0x4d8] sm:$0xff]   ;;  %v2337_v57 = vrot.slane %v2033_v0, %v5751_v56 }
 0x507   : > { %4678 = vmatprep.subr.bf16.mxu0 %v5174_v59  ;;  %4725 = vmatpush3.bf16.msra.mxu1 %v5191_v46  ;;  %v5210_v46 = vld [vmem:[#allocation5 + $0x498] sm:$0xff]  }
 0x508   : > { %4726 = vmatprep.subr.bf16.mxu1 %v5192_v47 }
 0x50a   : > { %4679 = vmatpush3.bf16.msra.mxu0 %v5174_v59  ;;  %v2345_v59 = vrot.slane %v2033_v0, %v5754_v58 }
 0x50b   : > { %4684 = vmatprep.subr.bf16.mxu0 %v5175_v60  ;;  %4727 = vmatpush3.bf16.msra.mxu1 %v5192_v47  ;;  %v5211_v47 = vld [vmem:[#allocation5 + $0x4a0] sm:$0xff]  }
 0x50c   : > { %4728 = vmatprep.subr.bf16.mxu1 %v5193_v48 }
 0x50f   : > { %4729 = vmatpush3.bf16.msra.mxu1 %v5193_v48  ;;  %v5212_v48 = vld [vmem:[#allocation5 + $0x4a8] sm:$0xff]  }
 0x510   : > { %4730 = vmatprep.subr.bf16.mxu1 %v5194_v49 }
 0x513   : > { %4731 = vmatpush3.bf16.msra.mxu1 %v5194_v49  ;;  %v5213_v49 = vld [vmem:[#allocation5 + $0x4b0] sm:$0xff]  }
 0x514   : > { %4732 = vmatprep.subr.bf16.mxu1 %v5195_v50 }
 0x517   : > { %4733 = vmatpush3.bf16.msra.mxu1 %v5195_v50  ;;  %v5214_v50 = vld [vmem:[#allocation5 + $0x4b8] sm:$0xff]  }
 0x518   : > { %4734 = vmatprep.subr.bf16.mxu1 %v5196_v51 }
 0x51b   : > { %4735 = vmatpush3.bf16.msra.mxu1 %v5196_v51 }
 0x51c   : > { %4736 = vmatprep.subr.bf16.mxu1 %v5197_v52 }
 0x51f   : > { %4737 = vmatpush3.bf16.msra.mxu1 %v5197_v52 }
 0x520   : > { %4738 = vmatprep.subr.bf16.mxu1 %v5198_v53 }
 0x523   : > { %4739 = vmatpush3.bf16.msra.mxu1 %v5198_v53 }
 0x524   : > { %4748 = vmatprep.subr.bf16.mxu1 %v5199_v54 }
 0x5b9   : > { %v1768_v1 = vpop.f32.mrb[8].mxu0 }
 0x5ba   : > { %v1957_v2 = vmul.f32 %v1956_v62, %v1768_v1  ;;  %v4622_v3 = vpop.f32.mrb[9].mxu0 }
 0x5bb   : > { %v1771_v4 = vpop.f32.mrb[10].mxu0 }
 0x5bc   : > { %v1963_v5 = vadd.f32 %v1962_v63, %v1957_v2  ;;  %v1958_v6 = vmul.f32 %v1956_v62, %v1771_v4  ;;  %v4623_v7 = vpop.f32.mrb[11].mxu0 }
 0x5be   : > { %v1964_v8 = vadd.f32 %v1962_v63, %v1958_v6  ;;  %v1965_v9 = vmax.f32 %v1963_v5, 0.0 }
 0x5c0   : > { %v1966_v10 = vmax.f32 %v1964_v8, 0.0 }
 0x5c2   : > { %v5880_v11 = vpack.c.bf16 %v1966_v10, %v1965_v9 }
 0x5c4   : > { %4680 = vmatprep.mubr.bf16.mxu0 %v5880_v11  ;;  %v2037_v40 = vshll.u32 %v5880_v11, 16  ;;  %v2035_v43 = vshrl.u32 %v5880_v11, 16 }
 0x5c6   : > { %v2039_v42 = vrot.slane %v2037_v40, 1  ;;  %v5204_v40 = vld [vmem:[#allocation5 + $0x528] sm:$0xff]  }
 0x5c8   : > { %v2040_v44 = vor.u32 %v2039_v42, %v2035_v43  ;;  %v5206_v42 = vld [vmem:[#allocation5 + $0x538] sm:$0xff]   ;;  %v5207_v43 = vld [vmem:[#allocation5 + $0x480] sm:$0xff]  }
 0x5ca   : > { %v2042_v45 = vsel %vm5706_vm6, %v2040_v44, 0  ;;  %v5208_v44 = vld [vmem:[#allocation5 + $0x488] sm:$0xff]  }
 0x5d9   : > { %v1946_v12 = vpop.f32.mrb[12].mxu1 }
 0x5da   : > { %v1967_v14 = vmul.f32 %v1956_v62, %v1946_v12  ;;  %v4662_v15 = vpop.f32.mrb[13].mxu1 }
 0x5db   : > { %v1949_v16 = vpop.f32.mrb[14].mxu1 }
 0x5dc   : > { %v1969_v17 = vadd.f32 %v1967_v14, %v1962_v63  ;;  %v1968_v19 = vmul.f32 %v1956_v62, %v1949_v16  ;;  %v4663_v21 = vpop.f32.mrb[15].mxu1 }
 0x5de   : > { %v1970_v22 = vadd.f32 %v1968_v19, %v1962_v63  ;;  %v1971_v23 = vmax.f32 %v1969_v17, 0.0 }
 0x5e0   : > { %v1972_v24 = vmax.f32 %v1970_v22, 0.0 }
 0x5e2   : > { %v3854_v55 = vpack.c.bf16 %v1972_v24, %v1971_v23 }
 0x5e4   : > { %4681 = vmatmul.mubr.msk.bf16.vlgmr.msra.gmra.mrb[12].mxu0 %vm5889_vm9, %v3854_v55 }
 0x5e5   : > { %4685 = vmatpush3.bf16.msra.mxu0 %v5175_v60  ;;  %4700 = vmatprep.mubr.bf16.mxu0 %v5880_v11 }
 0x5e6   : > { %4686 = vmatprep.subr.bf16.mxu0 %v5176_v26 }
 0x5e9   : > { %4687 = vmatpush3.bf16.msra.mxu0 %v5176_v26 }
 0x5ea   : > { %4688 = vmatprep.subr.bf16.mxu0 %v5177_v27 }
 0x5ed   : > { %4689 = vmatpush3.bf16.msra.mxu0 %v5177_v27 }
 0x5ee   : > { %4690 = vmatprep.subr.bf16.mxu0 %v5178_v28 }
 0x5f1   : > { %4691 = vmatpush3.bf16.msra.mxu0 %v5178_v28 }
 0x5f2   : > { %4692 = vmatprep.subr.bf16.mxu0 %v5179_v29 }
 0x5f5   : > { %4693 = vmatpush3.bf16.msra.mxu0 %v5179_v29 }
 0x5f6   : > { %4694 = vmatprep.subr.bf16.mxu0 %v5180_v30 }
 0x5f9   : > { %4695 = vmatpush3.bf16.msra.mxu0 %v5180_v30 }
 0x5fa   : > { %4696 = vmatprep.subr.bf16.mxu0 %v5181_v31 }
 0x5fd   : > { %4697 = vmatpush3.bf16.msra.mxu0 %v5181_v31 }
 0x5fe   : > { %4698 = vmatprep.subr.bf16.mxu0 %v5182_v32 }
 0x601   : > { %4699 = vmatpush3.bf16.msra.mxu0 %v5182_v32 }
 0x602   : > { %4704 = vmatprep.subr.bf16.mxu0 %v5183_v33 }
 0x604   : > { %4701 = vmatmul.mubr.msk.bf16.vlgmr.msra.gmra.mrb[16].mxu0 %vm5889_vm9, %v3854_v55 }
 0x605   : > { %4705 = vmatpush3.bf16.msra.mxu0 %v5183_v33  ;;  %4720 = vmatprep.mubr.msk.bf16.mxu0 %vm5889_vm9, %v3854_v55 }
 0x606   : > { %4706 = vmatprep.subr.bf16.mxu0 %v5184_v34 }
 0x609   : > { %4707 = vmatpush3.bf16.msra.mxu0 %v5184_v34 }
 0x60a   : > { %4708 = vmatprep.subr.bf16.mxu0 %v5185_v35 }
 0x60d   : > { %4709 = vmatpush3.bf16.msra.mxu0 %v5185_v35 }
 0x60e   : > { %4710 = vmatprep.subr.bf16.mxu0 %v5186_v36 }
 0x611   : > { %4711 = vmatpush3.bf16.msra.mxu0 %v5186_v36  ;;  %v5200_v36 = vld [vmem:[#allocation5 + $0x508] sm:$0xff]  }
 0x612   : > { %4712 = vmatprep.subr.bf16.mxu0 %v5187_v37 }
 0x615   : > { %4713 = vmatpush3.bf16.msra.mxu0 %v5187_v37  ;;  %v5201_v37 = vld [vmem:[#allocation5 + $0x510] sm:$0xff]  }
 0x616   : > { %4714 = vmatprep.subr.bf16.mxu0 %v5188_v38 }
 0x619   : > { %4715 = vmatpush3.bf16.msra.mxu0 %v5188_v38  ;;  %v5202_v38 = vld [vmem:[#allocation5 + $0x518] sm:$0xff]  }
 0x61a   : > { %4716 = vmatprep.subr.bf16.mxu0 %v5189_v39 }
 0x61d   : > { %4717 = vmatpush3.bf16.msra.mxu0 %v5189_v39  ;;  %v5203_v39 = vld [vmem:[#allocation5 + $0x520] sm:$0xff]  }
 0x61e   : > { %4718 = vmatprep.subr.bf16.mxu0 %v5190_v41 }
 0x621   : > { %4719 = vmatpush3.bf16.msra.mxu0 %v5190_v41  ;;  %v5205_v41 = vld [vmem:[#allocation5 + $0x530] sm:$0xff]  }
 0x624   : > { %4721 = vmatmul.mubr.bf16.vlgmr.msra.gmra.mrb[16].mxu0 %v2042_v45  ;;  %v5209_v45 = vld [vmem:[#allocation5 + $0x490] sm:$0xff]  }
 0x6b7   : > { %v4682_v60 = vpop.f32.mrb[12].mxu0 }
 0x6b8   : > { %v2340_v61 = vmul.f32 %v4682_v60, %v2337_v57  ;;  %v2125_v62 = vpop.f32.mrb[13].mxu0  ;;  %v5217_v60 = vld [vmem:[#allocation5 + $0x590] sm:$0xff]  }
 0x6b9   : > { %v2338_v63 = vmul.f32 %v2337_v57, %v2125_v62  ;;  %v4683_v1 = vpop.f32.mrb[14].mxu0  ;;  %v5219_v62 = vld [vmem:[#allocation5 + $0x5a0] sm:$0xff]  }
 0x6ba   : > { %v2348_v2 = vadd.f32 %v2345_v59, %v2340_v61  ;;  %v2341_v3 = vmul.f32 %v4683_v1, %v2337_v57  ;;  %v2128_v4 = vpop.f32.mrb[15].mxu0  ;;  %v5218_v61 = vld [vmem:[#allocation5 + $0x598] sm:$0xff]   ;;  %v5221_v1 = vld [vmem:[#allocation5 + $0x5b0] sm:$0xff]  }
 0x6bb   : > { %v2346_v5 = vadd.f32 %v2345_v59, %v2338_v63  ;;  %v2339_v6 = vmul.f32 %v2337_v57, %v2128_v4  ;;  %v5220_v63 = vld [vmem:[#allocation5 + $0x5a8] sm:$0xff]  }
 0x6bc   : > { %v2349_v7 = vadd.f32 %v2345_v59, %v2341_v3  ;;  %v2352_v9 = vmax.f32 %v2348_v2, 0.0  ;;  %v5222_v2 = vld [vmem:[#allocation5 + $0x5b8] sm:$0xff]   ;;  %v5937_v3 = vld [vmem:[#allocation5 + $0x540] sm:$0xff]   ;;  %v2426_v4 = vld [vmem:[#allocation7 + $0xc] sm:$0x3] }
 0x6bd   : > { %v2347_v8 = vadd.f32 %v2345_v59, %v2339_v6  ;;  %v2350_v11 = vmax.f32 %v2346_v5, 0.0  ;;  %v5941_v5 = vrot.slane %v2426_v4, %v5751_v56  ;;  %v5944_v6 = vrot.slane %v2426_v4, %v5754_v58 }
 0x6be   : > { %v2353_v10 = vmax.f32 %v2349_v7, 0.0 }
 0x6bf   : > { %v2351_v12 = vmax.f32 %v2347_v8, 0.0 }
 0x6c0   : > { %v5906_v14 = vpack.c.bf16 %v2353_v10, %v2352_v9 }
 0x6c1   : > { %v5908_v15 = vpack.c.bf16 %v2351_v12, %v2350_v11 }
 0x6c3   : > { %4740 = vmatprep.mubr.bf16.mxu1 %v5908_v15  ;;  %v2430_v51 = vshll.u32 %v5908_v15, 16  ;;  %v2428_v53 = vshrl.u32 %v5908_v15, 16 }
 0x6c5   : > { %v2432_v52 = vrot.slane %v2430_v51, 1 }
 0x6f7   : > { %v4722_v16 = vpop.f32.mrb[16].mxu0 }
 0x6f8   : > { %v2356_v17 = vmul.f32 %v4722_v16, %v2337_v57  ;;  %v2319_v19 = vpop.f32.mrb[17].mxu0 }
 0x6f9   : > { %v2354_v21 = vmul.f32 %v2337_v57, %v2319_v19  ;;  %v4723_v22 = vpop.f32.mrb[18].mxu0 }
 0x6fa   : > { %v2360_v23 = vadd.f32 %v2356_v17, %v2345_v59  ;;  %v2357_v24 = vmul.f32 %v4723_v22, %v2337_v57  ;;  %v2322_v55 = vpop.f32.mrb[19].mxu0 }
 0x6fb   : > { %v2358_v26 = vadd.f32 %v2354_v21, %v2345_v59  ;;  %v2355_v27 = vmul.f32 %v2337_v57, %v2322_v55  ;;  %v5215_v57 = vld [vmem:[#allocation5 + $0x580] sm:$0xff]  }
 0x6fc   : > { %v2361_v28 = vadd.f32 %v2357_v24, %v2345_v59  ;;  %v2364_v30 = vmax.f32 %v2360_v23, 0.0  ;;  %4796 = vmatprep.subr.bf16.mxu0 %v5215_v57 }
 0x6fd   : > { %v2359_v29 = vadd.f32 %v2355_v27, %v2345_v59  ;;  %v2362_v32 = vmax.f32 %v2358_v26, 0.0  ;;  %v5216_v59 = vld [vmem:[#allocation5 + $0x588] sm:$0xff]   ;;  %4797 = vmatpush3.bf16.msra.mxu0 %v5215_v57 }
 0x6fe   : > { %v2365_v31 = vmax.f32 %v2361_v28, 0.0  ;;  %4798 = vmatprep.subr.bf16.mxu0 %v5216_v59 }
 0x6ff   : > { %v2363_v33 = vmax.f32 %v2359_v29, 0.0 }
 0x700   : > { %v3893_v34 = vpack.c.bf16 %v2365_v31, %v2364_v30 }
 0x701   : > { %v3887_v35 = vpack.c.bf16 %v2363_v33, %v2362_v32  ;;  %4799 = vmatpush3.bf16.msra.mxu0 %v5216_v59 }
 0x702   : > { %4800 = vmatprep.subr.bf16.mxu0 %v5217_v60 }
 0x703   : > { %4741 = vmatmul.mubr.msk.bf16.vlgmr.msra.gmra.mrb[16].mxu1 %vm5889_vm9, %v3887_v35 }
 0x704   : > { %4749 = vmatpush3.bf16.msra.mxu1 %v5199_v54  ;;  %4744 = vmatprep.mubr.msk.bf16.mxu1 %vm5889_vm9, %v5906_v14  ;;  %v2433_v54 = vor.u32 %v2432_v52, %v2428_v53 }
 0x705   : > { %4750 = vmatprep.subr.bf16.mxu1 %v5200_v36  ;;  %4801 = vmatpush3.bf16.msra.mxu0 %v5217_v60 }
 0x706   : > { %v2435_v0 = vsel %vm5706_vm6, %v2433_v54, 0  ;;  %4802 = vmatprep.subr.bf16.mxu0 %v5218_v61 }
 0x708   : > { %4751 = vmatpush3.bf16.msra.mxu1 %v5200_v36 }
 0x709   : > { %4752 = vmatprep.subr.bf16.mxu1 %v5201_v37  ;;  %4803 = vmatpush3.bf16.msra.mxu0 %v5218_v61 }
 0x70a   : > { %4804 = vmatprep.subr.bf16.mxu0 %v5219_v62 }
 0x70b   : > { %4745 = vmatmul.mubr.msk.bf16.gmra.mrb[20].mxu1 %vm5889_vm9, %v3893_v34 }
 0x70c   : > { %4753 = vmatpush3.bf16.msra.mxu1 %v5201_v37  ;;  %4764 = vmatprep.mubr.bf16.mxu1 %v5908_v15 }
 0x70d   : > { %4754 = vmatprep.subr.bf16.mxu1 %v5202_v38  ;;  %4805 = vmatpush3.bf16.msra.mxu0 %v5219_v62 }
 0x70e   : > { %4806 = vmatprep.subr.bf16.mxu0 %v5220_v63 }
 0x710   : > { %4755 = vmatpush3.bf16.msra.mxu1 %v5202_v38 }
 0x711   : > { %4756 = vmatprep.subr.bf16.mxu1 %v5203_v39  ;;  %4807 = vmatpush3.bf16.msra.mxu0 %v5220_v63 }
 0x712   : > { %4808 = vmatprep.subr.bf16.mxu0 %v5221_v1 }
 0x714   : > { %4757 = vmatpush3.bf16.msra.mxu1 %v5203_v39 }
 0x715   : > { %4758 = vmatprep.subr.bf16.mxu1 %v5204_v40  ;;  %4809 = vmatpush3.bf16.msra.mxu0 %v5221_v1 }
 0x716   : > { %4810 = vmatprep.subr.bf16.mxu0 %v5222_v2 }
 0x718   : > { %4759 = vmatpush3.bf16.msra.mxu1 %v5204_v40 }
 0x719   : > { %4760 = vmatprep.subr.bf16.mxu1 %v5205_v41  ;;  %4811 = vmatpush3.bf16.msra.mxu0 %v5222_v2 }
 0x71a   : > { %4828 = vmatprep.subr.bf16.mxu0 %v5937_v3 }
 0x71c   : > { %4761 = vmatpush3.bf16.msra.mxu1 %v5205_v41 }
 0x71d   : > { %4762 = vmatprep.subr.bf16.mxu1 %v5206_v42 }
 0x720   : > { %4763 = vmatpush3.bf16.msra.mxu1 %v5206_v42 }
 0x721   : > { %4772 = vmatprep.subr.bf16.mxu1 %v5207_v43 }
 0x723   : > { %4765 = vmatmul.mubr.msk.bf16.vlgmr.msra.gmra.mrb[24].mxu1 %vm5889_vm9, %v3887_v35 }
 0x724   : > { %4768 = vmatprep.mubr.msk.bf16.mxu1 %vm5889_vm9, %v5906_v14  ;;  %4773 = vmatpush3.bf16.msra.mxu1 %v5207_v43 }
 0x725   : > { %4774 = vmatprep.subr.bf16.mxu1 %v5208_v44 }
 0x728   : > { %4775 = vmatpush3.bf16.msra.mxu1 %v5208_v44 }
 0x729   : > { %4776 = vmatprep.subr.bf16.mxu1 %v5209_v45 }
 0x72b   : > { %4769 = vmatmul.mubr.msk.bf16.gmra.mrb[28].mxu1 %vm5889_vm9, %v3893_v34 }
 0x72c   : > { %4777 = vmatpush3.bf16.msra.mxu1 %v5209_v45  ;;  %4788 = vmatprep.mubr.msk.bf16.mxu1 %vm5889_vm9, %v3887_v35 }
 0x72d   : > { %4778 = vmatprep.subr.bf16.mxu1 %v5210_v46 }
 0x730   : > { %4779 = vmatpush3.bf16.msra.mxu1 %v5210_v46 }
 0x731   : > { %4780 = vmatprep.subr.bf16.mxu1 %v5211_v47 }
 0x734   : > { %4781 = vmatpush3.bf16.msra.mxu1 %v5211_v47 }
 0x735   : > { %4782 = vmatprep.subr.bf16.mxu1 %v5212_v48 }
 0x738   : > { %4783 = vmatpush3.bf16.msra.mxu1 %v5212_v48 }
 0x739   : > { %4784 = vmatprep.subr.bf16.mxu1 %v5213_v49 }
 0x73c   : > { %4785 = vmatpush3.bf16.msra.mxu1 %v5213_v49 }
 0x73d   : > { %4786 = vmatprep.subr.bf16.mxu1 %v5214_v50 }
 0x740   : > { %4787 = vmatpush3.bf16.msra.mxu1 %v5214_v50 }
 0x743   : > { %4789 = vmatmul.mubr.msk.bf16.vlgmr.msra.gmra.mrb[24].mxu1 %vm5889_vm9, %v5906_v14 }
 0x744   : > { %4792 = vmatprep.mubr.msk.bf16.mxu1 %vm5889_vm9, %v3893_v34 }
 0x74b   : > { %4793 = vmatmul.mubr.bf16.gmra.mrb[28].mxu1 %v2435_v0 }
 0x7d6   : > { %v4742_v7 = vpop.f32.mrb[16].mxu1 }
 0x7d7   : > { %v2781_v8 = vmul.f32 %v4742_v7, %v5941_v5  ;;  %v2518_v9 = vpop.f32.mrb[17].mxu1 }
 0x7d8   : > { %v2779_v10 = vmul.f32 %v5941_v5, %v2518_v9  ;;  %v4743_v11 = vpop.f32.mrb[18].mxu1 }
 0x7d9   : > { %v2793_v12 = vadd.f32 %v5944_v6, %v2781_v8  ;;  %v2782_v14 = vmul.f32 %v4743_v11, %v5941_v5  ;;  %v2521_v15 = vpop.f32.mrb[19].mxu1  ;;  %v5224_v11 = vld [vmem:[#allocation5 + $0x548] sm:$0xff]  }
 0x7da   : > { %v2791_v16 = vadd.f32 %v5944_v6, %v2779_v10  ;;  %v2780_v17 = vmul.f32 %v5941_v5, %v2521_v15 }
 0x7db   : > { %v2794_v19 = vadd.f32 %v5944_v6, %v2782_v14  ;;  %v2801_v22 = vmax.f32 %v2793_v12, 0.0 }
 0x7dc   : > { %v2792_v21 = vadd.f32 %v5944_v6, %v2780_v17  ;;  %v2799_v24 = vmax.f32 %v2791_v16, 0.0 }
 0x7dd   : > { %v2802_v23 = vmax.f32 %v2794_v19, 0.0 }
 0x7de   : > { %v2800_v55 = vmax.f32 %v2792_v21, 0.0  ;;  %v4746_v26 = vpop.f32.mrb[20].mxu1 }
 0x7df   : > { %v5954_v27 = vpack.c.bf16 %v2802_v23, %v2801_v22  ;;  %v2785_v28 = vmul.f32 %v4746_v26, %v5941_v5  ;;  %v2534_v29 = vpop.f32.mrb[21].mxu1  ;;  %v5225_v22 = vld [vmem:[#allocation5 + $0x550] sm:$0xff]  }
 0x7e0   : > { %v5957_v30 = vpack.c.bf16 %v2800_v55, %v2799_v24  ;;  %v2783_v31 = vmul.f32 %v5941_v5, %v2534_v29  ;;  %v4747_v32 = vpop.f32.mrb[22].mxu1 }
 0x7e1   : > { %v2797_v33 = vadd.f32 %v5944_v6, %v2785_v28  ;;  %v2786_v34 = vmul.f32 %v4747_v32, %v5941_v5  ;;  %v2537_v35 = vpop.f32.mrb[23].mxu1  ;;  %v5228_v32 = vld [vmem:[#allocation5 + $0x568] sm:$0xff]  }
 0x7e2   : > { %v2795_v36 = vadd.f32 %v5944_v6, %v2783_v31  ;;  %v2784_v37 = vmul.f32 %v5941_v5, %v2537_v35  ;;  %4812 = vmatprep.mubr.bf16.mxu0 %v5957_v30  ;;  %v5226_v31 = vld [vmem:[#allocation5 + $0x558] sm:$0xff]  }
 0x7e3   : > { %v2798_v38 = vadd.f32 %v5944_v6, %v2786_v34  ;;  %v2805_v40 = vmax.f32 %v2797_v33, 0.0  ;;  %v5229_v34 = vld [vmem:[#allocation5 + $0x570] sm:$0xff]  }
 0x7e4   : > { %v2796_v39 = vadd.f32 %v5944_v6, %v2784_v37  ;;  %v2803_v42 = vmax.f32 %v2795_v36, 0.0  ;;  %v5230_v37 = vld [vmem:[#allocation5 + $0x578] sm:$0xff]  }
 0x7e5   : > { %v2806_v41 = vmax.f32 %v2798_v38, 0.0 }
 0x7e6   : > { %v2804_v43 = vmax.f32 %v2796_v39, 0.0  ;;  %v5231_v39 = vld [vmem:[#allocation5 + $0x5c0] sm:$0xff]  }
 0x7e7   : > { %v5967_v44 = vpack.c.bf16 %v2806_v41, %v2805_v40  ;;  %v5232_v40 = vld [vmem:[#allocation5 + $0x5c8] sm:$0xff]   ;;  %v5233_v41 = vld [vmem:[#allocation5 + $0x5d0] sm:$0xff]  }
 0x7e8   : > { %v5969_v45 = vpack.c.bf16 %v2804_v43, %v2803_v42  ;;  %v5235_v42 = vld [vmem:[#allocation5 + $0x5e0] sm:$0xff]   ;;  %v5236_v43 = vld [vmem:[#allocation5 + $0x5e8] sm:$0xff]  }
 0x816   : > { %v4790_v46 = vpop.f32.mrb[24].mxu1 }
 0x817   : > { %v2809_v47 = vmul.f32 %v4790_v46, %v5941_v5  ;;  %v2744_v48 = vpop.f32.mrb[25].mxu1  ;;  %v5237_v46 = vld [vmem:[#allocation5 + $0x5f0] sm:$0xff]  }
 0x818   : > { %v2807_v49 = vmul.f32 %v5941_v5, %v2744_v48  ;;  %v4791_v50 = vpop.f32.mrb[26].mxu1  ;;  %v2907_v48 = vshll.u32 %v5957_v30, 16 }
 0x819   : > { %v2817_v51 = vadd.f32 %v2809_v47, %v5944_v6  ;;  %v2810_v52 = vmul.f32 %v4791_v50, %v5941_v5  ;;  %v2747_v53 = vpop.f32.mrb[27].mxu1  ;;  %v5238_v47 = vld [vmem:[#allocation5 + $0x5f8] sm:$0xff]  }
 0x81a   : > { %v2815_v54 = vadd.f32 %v2807_v49, %v5944_v6  ;;  %v2808_v0 = vmul.f32 %v5941_v5, %v2747_v53  ;;  %v2909_v49 = vrot.slane %v2907_v48, 1 }
 0x81b   : > { %v2818_v57 = vadd.f32 %v2810_v52, %v5944_v6  ;;  %v2825_v60 = vmax.f32 %v2817_v51, 0.0  ;;  %v2903_v51 = vld [vmem:[#allocation7 + $0xe] sm:$0x3] }
 0x81c   : > { %v2816_v59 = vadd.f32 %v2808_v0, %v5944_v6  ;;  %v2823_v62 = vmax.f32 %v2815_v54, 0.0  ;;  %v6066_v52 = vrot.slane %v2903_v51, %v5751_v56  ;;  %v6069_v53 = vrot.slane %v2903_v51, %v5754_v58 }
 0x81d   : > { %v2826_v61 = vmax.f32 %v2818_v57, 0.0 }
 0x81e   : > { %v2824_v63 = vmax.f32 %v2816_v59, 0.0  ;;  %v4794_v1 = vpop.f32.mrb[28].mxu1 }
 0x81f   : > { %v5979_v2 = vpack.c.bf16 %v2826_v61, %v2825_v60  ;;  %v2813_v4 = vmul.f32 %v4794_v1, %v5941_v5  ;;  %v2760_v7 = vpop.f32.mrb[29].mxu1 }
 0x820   : > { %v5982_v8 = vpack.c.bf16 %v2824_v63, %v2823_v62  ;;  %v2811_v9 = vmul.f32 %v5941_v5, %v2760_v7  ;;  %v4795_v10 = vpop.f32.mrb[30].mxu1 }
 0x821   : > { %v2821_v12 = vadd.f32 %v2813_v4, %v5944_v6  ;;  %v2814_v14 = vmul.f32 %v4795_v10, %v5941_v5  ;;  %v2763_v15 = vpop.f32.mrb[31].mxu1 }
 0x822   : > { %v2819_v16 = vadd.f32 %v2811_v9, %v5944_v6  ;;  %v2812_v17 = vmul.f32 %v5941_v5, %v2763_v15  ;;  %4813 = vmatmul.mubr.msk.bf16.vlgmr.msra.gmra.mrb[20].mxu0 %vm5889_vm9, %v5982_v8 }
 0x823   : > { %v2822_v19 = vadd.f32 %v2814_v14, %v5944_v6  ;;  %4829 = vmatpush3.bf16.msra.mxu0 %v5937_v3  ;;  %4816 = vmatprep.mubr.msk.bf16.mxu0 %vm5889_vm9, %v5954_v27  ;;  %v2829_v23 = vmax.f32 %v2821_v12, 0.0 }
 0x824   : > { %v2820_v21 = vadd.f32 %v2812_v17, %v5944_v6  ;;  %4830 = vmatprep.subr.bf16.mxu0 %v5224_v11  ;;  %v2827_v55 = vmax.f32 %v2819_v16, 0.0 }
 0x825   : > { %v2830_v24 = vmax.f32 %v2822_v19, 0.0 }
 0x826   : > { %v2828_v5 = vmax.f32 %v2820_v21, 0.0 }
 0x827   : > { %v2844_v26 = vsel %vm1974_vm7, %v2830_v24, 0.0  ;;  %v6000_v28 = vpack.c.bf16 %v2830_v24, %v2829_v23  ;;  %4831 = vmatpush3.bf16.msra.mxu0 %v5224_v11 }
 0x828   : > { %v2852_v29 = vpack.c.bf16 %v2844_v26, %v2829_v23  ;;  %v6002_v3 = vpack.c.bf16 %v2828_v5, %v2827_v55  ;;  %4832 = vmatprep.subr.bf16.mxu0 %v5225_v22 }
 0x82a   : > { %4817 = vmatmul.mubr.msk.bf16.gmra.mrb[24].mxu0 %vm5889_vm9, %v5979_v2  ;;  %v2914_v6 = vshrl.u32 %v2852_v29, 16  ;;  %v2917_v35 = vshll.u32 %v2852_v29, 16 }
 0x82b   : > { %4833 = vmatpush3.bf16.msra.mxu0 %v5225_v22  ;;  %4820 = vmatprep.mubr.msk.bf16.mxu0 %vm5889_vm9, %v5969_v45 }
 0x82c   : > { %4834 = vmatprep.subr.bf16.mxu0 %v5226_v31  ;;  %v2916_v33 = vrot.slane %v2914_v6, 7 }
 0x82e   : > { %v2919_v36 = vor.u32 %v2917_v35, %v2916_v33 }
 0x82f   : > { %4835 = vmatpush3.bf16.msra.mxu0 %v5226_v31 }
 0x830   : > { %4836 = vmatprep.subr.bf16.mxu0 %v5227_v13  ;;  %v2921_v38 = vsel %vm5700_vm5, 0, %v2919_v36 }
 0x832   : > { %4821 = vmatmul.mubr.msk.bf16.gmra.mrb[28].mxu0 %vm5889_vm9, %v6002_v3 }
 0x833   : > { %4837 = vmatpush3.bf16.msra.mxu0 %v5227_v13  ;;  %4824 = vmatprep.mubr.msk.bf16.mxu0 %vm5889_vm9, %v5967_v44 }
 0x834   : > { %4838 = vmatprep.subr.bf16.mxu0 %v5228_v32 }
 0x837   : > { %4839 = vmatpush3.bf16.msra.mxu0 %v5228_v32 }
 0x838   : > { %4840 = vmatprep.subr.bf16.mxu0 %v5229_v34 }
 0x83a   : > { %4825 = vmatmul.mubr.msk.bf16.gmra.mrb[32].mxu0 %vm5889_vm9, %v6000_v28 }
 0x83b   : > { %4841 = vmatpush3.bf16.msra.mxu0 %v5229_v34  ;;  %4844 = vmatprep.mubr.bf16.mxu0 %v2921_v38 }
 0x83c   : > { %4842 = vmatprep.subr.bf16.mxu0 %v5230_v37 }
 0x83f   : > { %4843 = vmatpush3.bf16.msra.mxu0 %v5230_v37 }
 0x840   : > { %4860 = vmatprep.subr.bf16.mxu0 %v5231_v39 }
 0x842   : > { %4845 = vmatmul.mubr.bf16.vlgmr.msra.gmra.mrb[20].mxu0 %v5957_v30 }
 0x843   : > { %4861 = vmatpush3.bf16.msra.mxu0 %v5231_v39  ;;  %4848 = vmatprep.mubr.msk.bf16.mxu0 %vm5889_vm9, %v5982_v8 }
 0x844   : > { %4862 = vmatprep.subr.bf16.mxu0 %v5232_v40 }
 0x847   : > { %4863 = vmatpush3.bf16.msra.mxu0 %v5232_v40 }
 0x848   : > { %4864 = vmatprep.subr.bf16.mxu0 %v5233_v41 }
 0x84a   : > { %4849 = vmatmul.mubr.msk.bf16.gmra.mrb[24].mxu0 %vm5889_vm9, %v5954_v27 }
 0x84b   : > { %4865 = vmatpush3.bf16.msra.mxu0 %v5233_v41  ;;  %4852 = vmatprep.mubr.msk.bf16.mxu0 %vm5889_vm9, %v5979_v2 }
 0x84c   : > { %4866 = vmatprep.subr.bf16.mxu0 %v5234_v18 }
 0x84f   : > { %4867 = vmatpush3.bf16.msra.mxu0 %v5234_v18 }
 0x850   : > { %4868 = vmatprep.subr.bf16.mxu0 %v5235_v42 }
 0x852   : > { %4853 = vmatmul.mubr.msk.bf16.gmra.mrb[28].mxu0 %vm5889_vm9, %v5969_v45 }
 0x853   : > { %4869 = vmatpush3.bf16.msra.mxu0 %v5235_v42  ;;  %4856 = vmatprep.mubr.msk.bf16.mxu0 %vm5889_vm9, %v6002_v3 }
 0x854   : > { %4870 = vmatprep.subr.bf16.mxu0 %v5236_v43 }
 0x857   : > { %4871 = vmatpush3.bf16.msra.mxu0 %v5236_v43 }
 0x858   : > { %4872 = vmatprep.subr.bf16.mxu0 %v5237_v46 }
 0x85a   : > { %4857 = vmatmul.mubr.msk.bf16.gmra.mrb[32].mxu0 %vm5889_vm9, %v5967_v44 }
 0x85b   : > { %4873 = vmatpush3.bf16.msra.mxu0 %v5237_v46  ;;  %4876 = vmatprep.mubr.msk.bf16.mxu0 %vm5889_vm9, %v5982_v8 }
 0x85c   : > { %4874 = vmatprep.subr.bf16.mxu0 %v5238_v47 }
 0x85f   : > { %4875 = vmatpush3.bf16.msra.mxu0 %v5238_v47 }
 0x862   : > { %4877 = vmatmul.mubr.msk.bf16.vlgmr.msra.gmra.mrb[20].mxu0 %vm5889_vm9, %v5954_v27  ;;  %v2905_v27 = vshrl.u32 %v5957_v30, 16 }
 0x863   : > { %4880 = vmatprep.mubr.msk.bf16.mxu0 %vm5889_vm9, %v5979_v2 }
 0x864   : > { %v2910_v50 = vor.u32 %v2909_v49, %v2905_v27 }
 0x86a   : > { %4881 = vmatmul.mubr.msk.bf16.gmra.mrb[24].mxu0 %vm5889_vm9, %v5969_v45  ;;  %v2912_v45 = vsel %vm5706_vm6, %v2910_v50, 0 }
 0x86b   : > { %4884 = vmatprep.mubr.msk.bf16.mxu0 %vm5889_vm9, %v6002_v3 }
 0x872   : > { %4885 = vmatmul.mubr.msk.bf16.gmra.mrb[28].mxu0 %vm5889_vm9, %v5967_v44 }
 0x873   : > { %4888 = vmatprep.mubr.msk.bf16.mxu0 %vm5889_vm9, %v6000_v28 }
 0x87a   : > { %4889 = vmatmul.mubr.bf16.gmra.mrb[32].mxu0 %v2912_v45 }
 0x935   : > { %v4878_v54 = vpop.f32.mrb[20].mxu0 }
 0x936   : > { %v3379_v44 = vmul.f32 %v4878_v54, %v6066_v52  ;;  %v3294_v0 = vpop.f32.mrb[21].mxu0 }
 0x937   : > { %v3377_v25 = vmul.f32 %v6066_v52, %v3294_v0  ;;  %v4879_v57 = vpop.f32.mrb[22].mxu0 }
 0x938   : > { %v3399_v30 = vadd.f32 %v6069_v53, %v3379_v44  ;;  %v3380_v20 = vmul.f32 %v4879_v57, %v6066_v52  ;;  %v3297_v59 = vpop.f32.mrb[23].mxu0 }
 0x939   : > { %v3397_v60 = vadd.f32 %v6069_v53, %v3377_v25  ;;  %v3378_v56 = vmul.f32 %v6066_v52, %v3297_v59 }
 0x93a   : > { %v3415_v61 = vmax.f32 %v3399_v30, 0.0  ;;  %v3400_v58 = vadd.f32 %v6069_v53, %v3380_v20 }
 0x93b   : > { %v3413_v62 = vmax.f32 %v3397_v60, 0.0  ;;  %v3398_v63 = vadd.f32 %v6069_v53, %v3378_v56 }
 0x93c   : > { %v4015_v1 = vmul.f32 -1.442695, %v3415_v61  ;;  %v3416_v2 = vmax.f32 %v3400_v58, 0.0 }
 0x93d   : > { %v4013_v4 = vmul.f32 -1.442695, %v3413_v62  ;;  %v3414_v7 = vmax.f32 %v3398_v63, 0.0  ;;  %v4882_v8 = vpop.f32.mrb[24].mxu0 }
 0x93e   : > { %5239 = vpow2.f32 %v4015_v1  ;;  %v4016_v9 = vmul.f32 -1.442695, %v3416_v2  ;;  %v3383_v10 = vmul.f32 %v4882_v8, %v6066_v52  ;;  %v3310_v11 = vpop.f32.mrb[25].mxu0 }
 0x93f   : > { %5241 = vpow2.f32 %v4013_v4  ;;  %v4014_v12 = vmul.f32 -1.442695, %v3414_v7  ;;  %v3381_v14 = vmul.f32 %v6066_v52, %v3310_v11  ;;  %v4883_v15 = vpop.f32.mrb[26].mxu0 }
 0x940   : > { %5243 = vpow2.f32 %v4016_v9  ;;  %v3403_v16 = vadd.f32 %v6069_v53, %v3383_v10  ;;  %v3384_v17 = vmul.f32 %v4883_v15, %v6066_v52  ;;  %v3313_v19 = vpop.f32.mrb[27].mxu0 }
 0x941   : > { %5245 = vpow2.f32 %v4014_v12  ;;  %v3401_v21 = vadd.f32 %v6069_v53, %v3381_v14  ;;  %v3382_v22 = vmul.f32 %v6066_v52, %v3313_v19 }
 0x942   : > { %v3419_v23 = vmax.f32 %v3403_v16, 0.0  ;;  %v3404_v24 = vadd.f32 %v6069_v53, %v3384_v17 }
 0x943   : > { %v3417_v55 = vmax.f32 %v3401_v21, 0.0  ;;  %v3402_v5 = vadd.f32 %v6069_v53, %v3382_v22 }
 0x944   : > { %v4019_v26 = vmul.f32 -1.442695, %v3419_v23  ;;  %v3420_v28 = vmax.f32 %v3404_v24, 0.0 }
 0x945   : > { %v4017_v29 = vmul.f32 -1.442695, %v3417_v55  ;;  %v3418_v3 = vmax.f32 %v3402_v5, 0.0  ;;  %v4886_v31 = vpop.f32.mrb[28].mxu0 }
 0x946   : > { %5247 = vpow2.f32 %v4019_v26  ;;  %v4020_v13 = vmul.f32 -1.442695, %v3420_v28  ;;  %v3387_v6 = vmul.f32 %v4886_v31, %v6066_v52  ;;  %v3326_v32 = vpop.f32.mrb[29].mxu0 }
 0x947   : > { %5249 = vpow2.f32 %v4017_v29  ;;  %v4018_v33 = vmul.f32 -1.442695, %v3418_v3  ;;  %v3385_v34 = vmul.f32 %v6066_v52, %v3326_v32  ;;  %v4887_v35 = vpop.f32.mrb[30].mxu0 }
 0x948   : > { %v5240_v36 = vpop.eup %5239  ;;  %5251 = vpow2.f32 %v4020_v13  ;;  %v3407_v37 = vadd.f32 %v6069_v53, %v3387_v6  ;;  %v3388_v38 = vmul.f32 %v4887_v35, %v6066_v52  ;;  %v3329_v39 = vpop.f32.mrb[31].mxu0 }
 0x949   : > { %v5242_v40 = vpop.eup %5241  ;;  %v3479_v41 = vadd.f32 1.0, %v5240_v36  ;;  %5253 = vpow2.f32 %v4018_v33  ;;  %v3405_v18 = vadd.f32 %v6069_v53, %v3385_v34  ;;  %v3386_v42 = vmul.f32 %v6066_v52, %v3329_v39 }
 0x94a   : > { %v5244_v43 = vpop.eup %5243  ;;  %v3477_v46 = vadd.f32 1.0, %v5242_v40  ;;  %v3423_v47 = vmax.f32 %v3407_v37, 0.0  ;;  %v3408_v48 = vadd.f32 %v6069_v53, %v3388_v38 }
 0x94b   : > { %v5246_v49 = vpop.eup %5245  ;;  %5255 = vrcp.f32 %v3479_v41  ;;  %v3480_v27 = vadd.f32 1.0, %v5244_v43  ;;  %v3421_v50 = vmax.f32 %v3405_v18, 0.0  ;;  %v3406_v45 = vadd.f32 %v6069_v53, %v3386_v42 }
 0x94c   : > { %5257 = vrcp.f32 %v3477_v46  ;;  %v3478_v51 = vadd.f32 1.0, %v5246_v49  ;;  %v4023_v54 = vmul.f32 -1.442695, %v3423_v47  ;;  %v3424_v44 = vmax.f32 %v3408_v48, 0.0 }
 0x94d   : > { %5259 = vrcp.f32 %v3480_v27  ;;  %v4021_v0 = vmul.f32 -1.442695, %v3421_v50  ;;  %v3422_v25 = vmax.f32 %v3406_v45, 0.0  ;;  %v4890_v57 = vpop.f32.mrb[32].mxu0 }
 0x94e   : > { %5261 = vrcp.f32 %v3478_v51  ;;  %v4024_v30 = vmul.f32 -1.442695, %v3424_v44  ;;  %v3391_v20 = vmul.f32 %v4890_v57, %v6066_v52  ;;  %v3342_v59 = vpop.f32.mrb[33].mxu0 }
 0x94f   : > { %5263 = vpow2.f32 %v4023_v54  ;;  %v4022_v60 = vmul.f32 -1.442695, %v3422_v25  ;;  %v3389_v56 = vmul.f32 %v6066_v52, %v3342_v59  ;;  %v4891_v61 = vpop.f32.mrb[34].mxu0 }
 0x950   : > { %v5248_v58 = vpop.eup %5247  ;;  %5265 = vpow2.f32 %v4021_v0  ;;  %v3411_v62 = vadd.f32 %v6069_v53, %v3391_v20  ;;  %v3392_v63 = vmul.f32 %v4891_v61, %v6066_v52  ;;  %v3345_v1 = vpop.f32.mrb[35].mxu0 }
 0x951   : > { %v5250_v2 = vpop.eup %5249  ;;  %v3483_v4 = vadd.f32 1.0, %v5248_v58  ;;  %5267 = vpow2.f32 %v4024_v30  ;;  %v3409_v7 = vadd.f32 %v6069_v53, %v3389_v56  ;;  %v3390_v8 = vmul.f32 %v6066_v52, %v3345_v1 }
 0x952   : > { %v5252_v9 = vpop.eup %5251  ;;  %v3481_v10 = vadd.f32 1.0, %v5250_v2  ;;  %5269 = vpow2.f32 %v4022_v60  ;;  %v3427_v11 = vmax.f32 %v3411_v62, 0.0  ;;  %v3412_v12 = vadd.f32 %v6069_v53, %v3392_v63 }
 0x953   : > { %v5254_v14 = vpop.eup %5253  ;;  %5271 = vrcp.f32 %v3483_v4  ;;  %v3484_v15 = vadd.f32 1.0, %v5252_v9  ;;  %v3425_v16 = vmax.f32 %v3409_v7, 0.0  ;;  %v3410_v17 = vadd.f32 %v6069_v53, %v3390_v8 }
 0x954   : > { %5273 = vrcp.f32 %v3481_v10  ;;  %v3482_v19 = vadd.f32 1.0, %v5254_v14  ;;  %v4027_v21 = vmul.f32 -1.442695, %v3427_v11  ;;  %v3428_v22 = vmax.f32 %v3412_v12, 0.0 }
 0x955   : > { %v5256_v23 = vpop.eup %5255  ;;  %5275 = vrcp.f32 %v3484_v15  ;;  %v4025_v52 = vmul.f32 -1.442695, %v3425_v16  ;;  %v3426_v24 = vmax.f32 %v3410_v17, 0.0 }
 0x956   : > { %v5258_v55 = vpop.eup %5257  ;;  %5277 = vrcp.f32 %v3482_v19  ;;  %v4028_v5 = vmul.f32 -1.442695, %v3428_v22 }
 0x957   : > { %v5260_v26 = vpop.eup %5259  ;;  %5279 = vpow2.f32 %v4027_v21  ;;  %v4026_v28 = vmul.f32 -1.442695, %v3426_v24 }
 0x958   : > { %v5262_v29 = vpop.eup %5261  ;;  %v4076_v3 = vpack.c.bf16 %v5260_v26, %v5256_v23  ;;  %5281 = vpow2.f32 %v4025_v52 }
 0x959   : > { %v5264_v31 = vpop.eup %5263  ;;  %v4071_v53 = vpack.c.bf16 %v5262_v29, %v5258_v55  ;;  %5283 = vpow2.f32 %v4028_v5 }
 0x95a   : > { %v5266_v13 = vpop.eup %5265  ;;  %4108 = vst [vmem:[%s6104_s20 + $0x8] sm:$0xff] %v4076_v3   ;;  %v3487_v6 = vadd.f32 1.0, %v5264_v31  ;;  %5285 = vpow2.f32 %v4026_v28 }
 0x95b   : > { %v5268_v32 = vpop.eup %5267  ;;  %4072 = vst [vmem:[%s6104_s20] sm:$0xff] %v4071_v53   ;;  %v3485_v33 = vadd.f32 1.0, %v5266_v13 }
 0x95c   : > { %v5270_v34 = vpop.eup %5269  ;;  %5287 = vrcp.f32 %v3487_v6  ;;  %v3488_v35 = vadd.f32 1.0, %v5268_v32 }
 0x95d   : > { %v5272_v36 = vpop.eup %5271  ;;  %5289 = vrcp.f32 %v3485_v33  ;;  %v3486_v37 = vadd.f32 1.0, %v5270_v34 }
 0x95e   : > { %v5274_v38 = vpop.eup %5273  ;;  %5291 = vrcp.f32 %v3488_v35 }
 0x95f   : > { %v5276_v39 = vpop.eup %5275  ;;  %5293 = vrcp.f32 %v3486_v37 }
 0x960   : > { %v5278_v40 = vpop.eup %5277  ;;  %v4086_v41 = vpack.c.bf16 %v5276_v39, %v5272_v36 }
 0x961   : > { %v5280_v18 = vpop.eup %5279  ;;  %v4081_v42 = vpack.c.bf16 %v5278_v40, %v5274_v38 }
 0x962   : > { %v5282_v43 = vpop.eup %5281  ;;  %4110 = vst [vmem:[%s6104_s20 + $0x18] sm:$0xff] %v4086_v41   ;;  %v3491_v46 = vadd.f32 1.0, %v5280_v18 }
 0x963   : > { %v5284_v47 = vpop.eup %5283  ;;  %4109 = vst [vmem:[%s6104_s20 + $0x10] sm:$0xff] %v4081_v42   ;;  %v3489_v48 = vadd.f32 1.0, %v5282_v43 }
 0x964   : > { %v5286_v49 = vpop.eup %5285  ;;  %5295 = vrcp.f32 %v3491_v46  ;;  %v3492_v27 = vadd.f32 1.0, %v5284_v47 }
 0x965   : > { %5297 = vrcp.f32 %v3489_v48  ;;  %v3490_v50 = vadd.f32 1.0, %v5286_v49 }
 0x966   : > { %v5288_v45 = vpop.eup %5287  ;;  %5299 = vrcp.f32 %v3492_v27 }
 0x967   : > { %v5290_v51 = vpop.eup %5289  ;;  %5301 = vrcp.f32 %v3490_v50 }
 0x968   : > { %v5292_v54 = vpop.eup %5291 }
 0x969   : > { %v5294_v44 = vpop.eup %5293  ;;  %v4096_v0 = vpack.c.bf16 %v5292_v54, %v5288_v45 }
 0x96a   : > { %v4091_v25 = vpack.c.bf16 %v5294_v44, %v5290_v51 }
 0x96b   : > { %4112 = vst [vmem:[%s6104_s20 + $0x28] sm:$0xff] %v4096_v0  }
 0x96c   : > { %4111 = vst [vmem:[%s6104_s20 + $0x20] sm:$0xff] %v4091_v25  }
 0x96e   : > { %v5296_v57 = vpop.eup %5295 }
 0x96f   : > { %v5298_v30 = vpop.eup %5297 }
 0x970   : > { %v5300_v20 = vpop.eup %5299 }
 0x971   : > { %v5302_v59 = vpop.eup %5301  ;;  %v4106_v60 = vpack.c.bf16 %v5300_v20, %v5296_v57 }
 0x972   : > { %v4101_v56 = vpack.c.bf16 %v5302_v59, %v5298_v30 }
 0x973   : > { %4114 = vst [vmem:[%s6104_s20 + $0x38] sm:$0xff] %v4106_v60  }
 0x974   : > { %4113 = vst [vmem:[%s6104_s20 + $0x30] sm:$0xff] %v4101_v56  }
 0x975   : > { %5402 = shalt.err (!%p5399_p1)
}
 0x976   : > { %s5403_s24 = scalar_lea.hbm %s6117_s29, 1024  ;;  %s5407_s5 = scalar_lea.hbm %s6168_s3, 2048 }
 0x977   : > { %p5404_p13 = scmp.ne.s32.totalorder %s6117_s29, %s5403_s24  ;;  %p5408_p4 = scmp.lt.u32.totalorder %s6117_s29, %s6168_s3 }
 0x978   : > { %p5409_p7 = scmp.lt.u32.totalorder %s5407_s5, %s5403_s24  ;;  %p5411_p8 = scmp.lt.u32.totalorder %s5403_s24, %s6117_s29 }
 0x979   : > { %p5405_p6 = pnand %p5404_p13, %p6188_p0 }
 0x97a   : > { %p5410_p11 = por %p5409_p7, %p5408_p4 }
 0x97b   : > { %p5406_p10 = pneg %p5405_p6 }
 0x97c   : > { %p5412_p2 = por %p5411_p8, %p5410_p11 }
 0x97e   : > { %p5413_p3 = pnand %p5412_p2, %p5406_p10 }
 0x980   : > { %5416 = shalt.err (!%p5413_p3)
}
 0x981   : > { %s5472_s18 = smov 64   ;;  %s5473_s20 = smov 4  }
 0x982   : > { %4980 = dma.vmem_to_hbm [thread:$0]  (%p6188_p0), %s6119_s8, 1024, %s6117_s29, %s3606_s30, %s5472_s18, %s5472_s18, %s5473_s20  }
 0x983 PF: > { %s3634_s7 = sand.u32 1, %s5447_s12   ;;  %p6189_p5 = scmp.ne.s32.totalorder %s6173_s19, 0 }
 0x984   : > { %p6190_p9 = scmp.ge.s32.totalorder %s5459_s15, 2  ;;  %s3635_s27 = scalar_lea.sflag [#allocation4], %s3634_s7 }
 0x986   : > { %p4994_p12 = pnand %p6190_p9, %p6189_p5 }
 0x988   : > { %5442 = dma.done.wait (!%p4994_p12), %s3635_s27, 1024  }
 0x989   : > { %5444 = vsyncadd (!%p4994_p12), %s3635_s27, 4294966272  ;;  %p17_p1 = scmp.ge.s32.totalorder %s5607_s6, 4   ;;  %s6191_s12 = smov %s5451_s13 }
 0x98a   : > { %s6192_s13 = smov %s5455_s14  ;;  %s6193_s14 = smov %s5616_s11 }
 0x98b   : > { %s6194_s15 = smov %s5607_s6  ;;  %19 = sbr.rel (!%p17_p1) target bundleno = 6 (0x6), region = 99 }
 0x992   :  { %3640 = vsyncpa [#allocation3], 1 }
 0x993   :  { %3642 = vsyncpa [#allocation3 + $0x1], 1 }
 0x994   :  { %3643 = vsyncpa [#allocation6], 1 }
 0x995   :  { %3644 = vsyncpa [#allocation4], 1 }
 0x996   :  { %3646 = vsyncpa [#allocation4 + $0x1], 1 }

</bundles_post_ra>
